<compile_context>
chip_gen: v7x
topology: tpu7x:2x2x1
jax: 0.10.0
libtpu: 0.0.40
codegen_flags: <defaults>
</compile_context>

<pallas_src>
import jax
import jax.numpy as jnp
from jax.experimental import pallas as pl
from jax.experimental.pallas import tpu as pltpu

LEAK = 0.2


def _leaky_relu(x):
    return jnp.where(x > 0, x, LEAK * x)


def _round_up(n, m):
    return ((n + m - 1) // m) * m


def _disc_mlp_kernel(img_ref, embc_ref,
                     w1i_ref,
                     w2_ref, b2_ref,
                     w3_ref, b3_ref,
                     w45_ref, b45_ref,
                     o_ref):
    """Fused MLP: (Linear+LReLU) x3, folded Linear(256->1), Sigmoid.

    bf16 operands into each MXU matmul, f32 accumulation. Dropout layers are
    identity at inference.
    """
    # Layer 1: Linear(CHW + classes -> 1024) + LeakyReLU(0.2).
    # Embedding contribution and b1 are pre-folded into embc_ref (exact).
    h = (jnp.dot(img_ref[...], w1i_ref[...], preferred_element_type=jnp.float32)
         + embc_ref[...])
    h = _leaky_relu(h)

    # Layer 2: Linear(1024 -> 512) [+ Dropout(0.4) = identity] + LeakyReLU(0.2)
    # TODO(synk): training-mode dropout (random masking / 1/(1-p) rescale) not implemented.
    h = jnp.dot(h.astype(jnp.bfloat16), w2_ref[...],
                preferred_element_type=jnp.float32) + b2_ref[...]
    h = _leaky_relu(h)

    # Layer 3: Linear(512 -> 256) [+ Dropout(0.4) = identity] + LeakyReLU(0.2)
    h = jnp.dot(h.astype(jnp.bfloat16), w3_ref[...],
                preferred_element_type=jnp.float32) + b3_ref[...]
    h = _leaky_relu(h)

    # Layers 4+5 folded: Linear(256 -> 128) then Linear(128 -> 1), no activation
    # in between -> a single 256 -> 1 linear; then Sigmoid (exp + recip on EUP).
    h = jnp.dot(h.astype(jnp.bfloat16), w45_ref[...],
                preferred_element_type=jnp.float32) + b45_ref[...]
    o_ref[...] = pl.reciprocal(1.0 + jnp.exp(-h), approx=True)


def init_params(key, classes, channels, img_size):
    """PyTorch-default-style init. Returns (kernel_params, f32 reference params).

    nn.Linear: U(-1/sqrt(fan_in), 1/sqrt(fan_in)) for weight and bias.
    nn.Embedding: N(0, 1). Weights stored (in_features, out_features).
    """
    chw = channels * img_size * img_size
    d0 = classes + chw
    layer_dims = [(d0, 1024), (1024, 512), (512, 256), (256, 128), (128, 1)]

    keys = jax.random.split(key, 2 * len(layer_dims) + 1)
    emb = jax.random.normal(keys[0], (classes, classes), jnp.float32)

    ws, bs = [], []
    for li, (fan_in, fan_out) in enumerate(layer_dims):
        bound = float(fan_in) ** -0.5
        ws.append(jax.random.uniform(keys[1 + 2 * li], (fan_in, fan_out),
                                     jnp.float32, -bound, bound))
        bs.append(jax.random.uniform(keys[2 + 2 * li], (1, fan_out),
                                     jnp.float32, -bound, bound))

    # Fold layers 4 and 5 (exact: no activation / dropout between them).
    w45 = ws[3] @ ws[4]             # (256, 1)
    b45 = bs[3] @ ws[4] + bs[4]     # (1, 1)

    kernel_params = {
        # image part of W1, bf16.
        "w1_img": ws[0][:chw].astype(jnp.bfloat16),
        # Per-class layer-1 contribution of the label embedding + layer-1 bias
        # (f32, exact init-time fold): (E @ W1[chw:] + b1)[labels]
        #   == E[labels] @ W1[chw:] + b1.
        "emb_w1": emb @ ws[0][chw:] + bs[0],             # (classes, 1024)
        "w2": ws[1].astype(jnp.bfloat16), "b2": bs[1],
        "w3": ws[2].astype(jnp.bfloat16), "b3": bs[2],
        "w45": w45.astype(jnp.bfloat16), "b45": b45,
    }
    ref_params = {"emb": emb, "ws": ws, "bs": bs}
    return kernel_params, ref_params


@jax.jit
def discriminator_forward(image, labels, params):
    """Matches Discriminator.forward(image, labels); returns (B, 1) in [0, 1]."""
    B = image.shape[0]
    img_flat = image.reshape(B, -1).astype(jnp.bfloat16)     # (B, CHW)
    emb_contrib = params["emb_w1"][labels]                   # (B, 1024) gather glue
    chw = img_flat.shape[1]
    d1 = emb_contrib.shape[1]

    # Batch tiling: M-tile is a multiple of 8 sublanes, capped at 256 (MXU rows
    # on v6e/v7x); pad the batch up to a whole number of tiles (rows of zeros,
    # sliced off at the end).
    block_m = min(256, _round_up(B, 8))
    b_pad = _round_up(B, block_m)
    if b_pad != B:
        img_flat = jnp.pad(img_flat, ((0, b_pad - B), (0, 0)))
        emb_contrib = jnp.pad(emb_contrib, ((0, b_pad - B), (0, 0)))

    def _tile(d):      # batch-tiled activation input
        return pl.BlockSpec((block_m, d), lambda i: (i, 0))

    def _whole(a):     # VMEM-resident parameter (constant block index -> no re-DMA)
        return pl.BlockSpec(a.shape, lambda i: (0, 0))

    args = (img_flat, emb_contrib,
            params["w1_img"],
            params["w2"], params["b2"],
            params["w3"], params["b3"],
            params["w45"], params["b45"])
    in_specs = [_tile(chw), _tile(d1)] + [_whole(a) for a in args[2:]]

    out = pl.pallas_call(
        _disc_mlp_kernel,
        out_shape=jax.ShapeDtypeStruct((b_pad, 1), jnp.float32),
        grid_spec=pltpu.PrefetchScalarGridSpec(
            num_scalar_prefetch=0,
            grid=(b_pad // block_m,),
            in_specs=in_specs,
            out_specs=pl.BlockSpec((block_m, 1), lambda i: (i, 0)),
        ),
        compiler_params=pltpu.CompilerParams(
            dimension_semantics=("parallel",),
            vmem_limit_bytes=32 * 1024 * 1024,
        ),
    )(*args)
    return out[:B]


def _reference_kernel_math(image, labels, params):
    """Pure-JAX mirror of the kernel math (bf16 weights, folded layers)."""
    B = image.shape[0]
    img = image.reshape(B, -1).astype(jnp.bfloat16)
    h = (jnp.dot(img, params["w1_img"], preferred_element_type=jnp.float32)
         + params["emb_w1"][labels])
    h = _leaky_relu(h)
    h = jnp.dot(h.astype(jnp.bfloat16), params["w2"],
                preferred_element_type=jnp.float32) + params["b2"]
    h = _leaky_relu(h)
    h = jnp.dot(h.astype(jnp.bfloat16), params["w3"],
                preferred_element_type=jnp.float32) + params["b3"]
    h = _leaky_relu(h)
    h = jnp.dot(h.astype(jnp.bfloat16), params["w45"],
                preferred_element_type=jnp.float32) + params["b45"]
    return jax.nn.sigmoid(h)


def _reference_module(image, labels, ref):
    """f32, unfolded, module-faithful reference (inference-mode dropout)."""
    B = image.shape[0]
    x = jnp.concatenate([image.reshape(B, -1), ref["emb"][labels]], axis=-1)
    h = _leaky_relu(x @ ref["ws"][0] + ref["bs"][0])
    h = _leaky_relu(h @ ref["ws"][1] + ref["bs"][1])
    h = _leaky_relu(h @ ref["ws"][2] + ref["bs"][2])
    h = h @ ref["ws"][3] + ref["bs"][3]
    h = h @ ref["ws"][4] + ref["bs"][4]
    return jax.nn.sigmoid(h)


if __name__ == "__main__":
    # Small, module-consistent shapes.
    classes = 10
    channels = 1
    img_size = 16
    batch = 2

    key = jax.random.PRNGKey(0)
    k_img, k_lab, k_par = jax.random.split(key, 3)

    image = jax.random.normal(k_img, (batch, channels, img_size, img_size), jnp.float32)
    labels = jax.random.randint(k_lab, (batch,), 0, classes, jnp.int32)
    params, ref_params = init_params(k_par, classes, channels, img_size)

    out = jax.block_until_ready(discriminator_forward(image, labels, params))

    ref_kernel = _reference_kernel_math(image, labels, params)   # same math, pure JAX
    ref_module = _reference_module(image, labels, ref_params)    # f32 original module

    assert out.shape == (batch, 1)
    assert bool(jnp.all((out >= 0.0) & (out <= 1.0)))
    # Tight check vs. identical (bf16, folded) math; slack only for approx recip.
    assert bool(jnp.allclose(out, ref_kernel, atol=5e-3, rtol=5e-3)), (out, ref_kernel)
    # Loose check vs. the f32 unfolded module (bf16 weight quantization error).
    assert bool(jnp.allclose(out, ref_module, atol=2e-2, rtol=2e-2)), (out, ref_module)

    print("KERNEL_OK")
</pallas_src>

<mosaic_0001>
module attributes {stable_mosaic.version = 11 : i64} {
  func.func @_disc_mlp_kernel(%arg0: i32, %arg1: memref<8x256xbf16, #tpu.memory_space<vmem>>, %arg2: memref<8x1024xf32, #tpu.memory_space<vmem>>, %arg3: memref<256x1024xbf16, #tpu.memory_space<vmem>>, %arg4: memref<1024x512xbf16, #tpu.memory_space<vmem>>, %arg5: memref<1x512xf32, #tpu.memory_space<vmem>>, %arg6: memref<512x256xbf16, #tpu.memory_space<vmem>>, %arg7: memref<1x256xf32, #tpu.memory_space<vmem>>, %arg8: memref<256x1xbf16, #tpu.memory_space<vmem>>, %arg9: memref<1x1xf32, #tpu.memory_space<vmem>>, %arg10: memref<8x1xf32, #tpu.memory_space<vmem>>) attributes {dimension_semantics = [#tpu.dimension_semantics<parallel>], iteration_bounds = array<i64: 1>, scalar_prefetch = 0 : i64, scratch_operands = 0 : i64, tpu.core_type = #tpu.core_type<tc>, window_params = [{transform_indices = @transform_0, window_bounds = array<i64: 8, 256>}, {transform_indices = @transform_1, window_bounds = array<i64: 8, 1024>}, {pipeline_mode = #tpu.pipeline_mode<synchronous>, transform_indices = @transform_2, window_bounds = array<i64: 256, 1024>}, {pipeline_mode = #tpu.pipeline_mode<synchronous>, transform_indices = @transform_3, window_bounds = array<i64: 1024, 512>}, {pipeline_mode = #tpu.pipeline_mode<synchronous>, transform_indices = @transform_4, window_bounds = array<i64: 1, 512>}, {pipeline_mode = #tpu.pipeline_mode<synchronous>, transform_indices = @transform_5, window_bounds = array<i64: 512, 256>}, {pipeline_mode = #tpu.pipeline_mode<synchronous>, transform_indices = @transform_6, window_bounds = array<i64: 1, 256>}, {pipeline_mode = #tpu.pipeline_mode<synchronous>, transform_indices = @transform_7, window_bounds = array<i64: 256, 1>}, {pipeline_mode = #tpu.pipeline_mode<synchronous>, transform_indices = @transform_8, window_bounds = array<i64: 1, 1>}, {transform_indices = @transform_9, window_bounds = array<i64: 8, 1>}]} {
    %c0 = arith.constant 0 : index
    %c0_0 = arith.constant 0 : index
    %0 = vector.load %arg1[%c0, %c0_0] : memref<8x256xbf16, #tpu.memory_space<vmem>>, vector<8x256xbf16>
    %c0_1 = arith.constant 0 : index
    %c0_2 = arith.constant 0 : index
    %1 = vector.load %arg3[%c0_1, %c0_2] : memref<256x1024xbf16, #tpu.memory_space<vmem>>, vector<256x1024xbf16>
    %cst = arith.constant dense<0.000000e+00> : vector<8x1024xf32>
    %2 = tpu.matmul %0, %1, %cst {dimension_numbers = #tpu.dot_dimension_numbers<[1], [0], [0], [1], [0, 0, 1, 1], [], []>} : vector<8x256xbf16>, vector<256x1024xbf16>, vector<8x1024xf32> -> vector<8x1024xf32>
    %c0_3 = arith.constant 0 : index
    %c0_4 = arith.constant 0 : index
    %3 = vector.load %arg2[%c0_3, %c0_4] : memref<8x1024xf32, #tpu.memory_space<vmem>>, vector<8x1024xf32>
    %4 = arith.addf %2, %3 : vector<8x1024xf32>
    %cst_5 = arith.constant 0.000000e+00 : f32
    %5 = vector.broadcast %cst_5 : f32 to vector<8x1024xf32>
    %6 = arith.cmpf ogt, %4, %5 : vector<8x1024xf32>
    %cst_6 = arith.constant 2.000000e-01 : f32
    %7 = vector.broadcast %cst_6 : f32 to vector<8x1024xf32>
    %8 = arith.mulf %7, %4 : vector<8x1024xf32>
    %9 = arith.select %6, %4, %8 : vector<8x1024xi1>, vector<8x1024xf32>
    %10 = arith.truncf %9 : vector<8x1024xf32> to vector<8x1024xbf16>
    %c0_7 = arith.constant 0 : index
    %c0_8 = arith.constant 0 : index
    %11 = vector.load %arg4[%c0_7, %c0_8] : memref<1024x512xbf16, #tpu.memory_space<vmem>>, vector<1024x512xbf16>
    %cst_9 = arith.constant dense<0.000000e+00> : vector<8x512xf32>
    %12 = tpu.matmul %10, %11, %cst_9 {dimension_numbers = #tpu.dot_dimension_numbers<[1], [0], [0], [1], [0, 0, 1, 1], [], []>} : vector<8x1024xbf16>, vector<1024x512xbf16>, vector<8x512xf32> -> vector<8x512xf32>
    %c0_10 = arith.constant 0 : index
    %c0_11 = arith.constant 0 : index
    %13 = vector.load %arg5[%c0_10, %c0_11] : memref<1x512xf32, #tpu.memory_space<vmem>>, vector<1x512xf32>
    %14 = vector.broadcast %13 : vector<1x512xf32> to vector<8x512xf32>
    %15 = arith.addf %12, %14 : vector<8x512xf32>
    %cst_12 = arith.constant 0.000000e+00 : f32
    %16 = vector.broadcast %cst_12 : f32 to vector<8x512xf32>
    %17 = arith.cmpf ogt, %15, %16 : vector<8x512xf32>
    %cst_13 = arith.constant 2.000000e-01 : f32
    %18 = vector.broadcast %cst_13 : f32 to vector<8x512xf32>
    %19 = arith.mulf %18, %15 : vector<8x512xf32>
    %20 = arith.select %17, %15, %19 : vector<8x512xi1>, vector<8x512xf32>
    %21 = arith.truncf %20 : vector<8x512xf32> to vector<8x512xbf16>
    %c0_14 = arith.constant 0 : index
    %c0_15 = arith.constant 0 : index
    %22 = vector.load %arg6[%c0_14, %c0_15] : memref<512x256xbf16, #tpu.memory_space<vmem>>, vector<512x256xbf16>
    %cst_16 = arith.constant dense<0.000000e+00> : vector<8x256xf32>
    %23 = tpu.matmul %21, %22, %cst_16 {dimension_numbers = #tpu.dot_dimension_numbers<[1], [0], [0], [1], [0, 0, 1, 1], [], []>} : vector<8x512xbf16>, vector<512x256xbf16>, vector<8x256xf32> -> vector<8x256xf32>
    %c0_17 = arith.constant 0 : index
    %c0_18 = arith.constant 0 : index
    %24 = vector.load %arg7[%c0_17, %c0_18] : memref<1x256xf32, #tpu.memory_space<vmem>>, vector<1x256xf32>
    %25 = vector.broadcast %24 : vector<1x256xf32> to vector<8x256xf32>
    %26 = arith.addf %23, %25 : vector<8x256xf32>
    %cst_19 = arith.constant 0.000000e+00 : f32
    %27 = vector.broadcast %cst_19 : f32 to vector<8x256xf32>
    %28 = arith.cmpf ogt, %26, %27 : vector<8x256xf32>
    %cst_20 = arith.constant 2.000000e-01 : f32
    %29 = vector.broadcast %cst_20 : f32 to vector<8x256xf32>
    %30 = arith.mulf %29, %26 : vector<8x256xf32>
    %31 = arith.select %28, %26, %30 : vector<8x256xi1>, vector<8x256xf32>
    %32 = arith.truncf %31 : vector<8x256xf32> to vector<8x256xbf16>
    %c0_21 = arith.constant 0 : index
    %c0_22 = arith.constant 0 : index
    %33 = vector.load %arg8[%c0_21, %c0_22] : memref<256x1xbf16, #tpu.memory_space<vmem>>, vector<256x1xbf16>
    %cst_23 = arith.constant dense<0.000000e+00> : vector<8x1xf32>
    %34 = tpu.matmul %32, %33, %cst_23 {dimension_numbers = #tpu.dot_dimension_numbers<[1], [0], [0], [1], [0, 0, 1, 1], [], []>} : vector<8x256xbf16>, vector<256x1xbf16>, vector<8x1xf32> -> vector<8x1xf32>
    %c0_24 = arith.constant 0 : index
    %c0_25 = arith.constant 0 : index
    %35 = vector.load %arg9[%c0_24, %c0_25] : memref<1x1xf32, #tpu.memory_space<vmem>>, vector<1x1xf32>
    %36 = vector.broadcast %35 : vector<1x1xf32> to vector<8x1xf32>
    %37 = arith.addf %34, %36 : vector<8x1xf32>
    %cst_26 = arith.constant 0.000000e+00 : f32
    %38 = vector.broadcast %cst_26 : f32 to vector<8x1xf32>
    %39 = arith.subf %38, %37 : vector<8x1xf32>
    %40 = math.exp %39 : vector<8x1xf32>
    %cst_27 = arith.constant 1.000000e+00 : f32
    %41 = vector.broadcast %cst_27 : f32 to vector<8x1xf32>
    %42 = arith.addf %41, %40 : vector<8x1xf32>
    %43 = tpu.reciprocal %42 {approx = true} : vector<8x1xf32> -> vector<8x1xf32>
    %c0_28 = arith.constant 0 : index
    %c0_29 = arith.constant 0 : index
    %44 = vector.load %arg10[%c0_28, %c0_29] : memref<8x1xf32, #tpu.memory_space<vmem>>, vector<8x1xf32>
    tpu.vector_store %arg10[%c0_28, %c0_29], %43 {strides = array<i32>} : memref<8x1xf32, #tpu.memory_space<vmem>>, vector<8x1xf32>,
    return
  }
  func.func @transform_0(%arg0: i32) -> (i32, i32) {
    %c0_i32 = arith.constant 0 : i32
    %c0_i32_0 = arith.constant 0 : i32
    return %arg0, %c0_i32 : i32, i32
  }
  func.func @transform_1(%arg0: i32) -> (i32, i32) {
    %c0_i32 = arith.constant 0 : i32
    %c0_i32_0 = arith.constant 0 : i32
    return %arg0, %c0_i32 : i32, i32
  }
  func.func @transform_2(%arg0: i32) -> (i32, i32) {
    %c0_i32 = arith.constant 0 : i32
    %c0_i32_0 = arith.constant 0 : i32
    %c0_i32_1 = arith.constant 0 : i32
    return %c0_i32, %c0_i32_0 : i32, i32
  }
  func.func @transform_3(%arg0: i32) -> (i32, i32) {
    %c0_i32 = arith.constant 0 : i32
    %c0_i32_0 = arith.constant 0 : i32
    %c0_i32_1 = arith.constant 0 : i32
    return %c0_i32, %c0_i32_0 : i32, i32
  }
  func.func @transform_4(%arg0: i32) -> (i32, i32) {
    %c0_i32 = arith.constant 0 : i32
    %c0_i32_0 = arith.constant 0 : i32
    %c0_i32_1 = arith.constant 0 : i32
    return %c0_i32, %c0_i32_0 : i32, i32
  }
  func.func @transform_5(%arg0: i32) -> (i32, i32) {
    %c0_i32 = arith.constant 0 : i32
    %c0_i32_0 = arith.constant 0 : i32
    %c0_i32_1 = arith.constant 0 : i32
    return %c0_i32, %c0_i32_0 : i32, i32
  }
  func.func @transform_6(%arg0: i32) -> (i32, i32) {
    %c0_i32 = arith.constant 0 : i32
    %c0_i32_0 = arith.constant 0 : i32
    %c0_i32_1 = arith.constant 0 : i32
    return %c0_i32, %c0_i32_0 : i32, i32
  }
  func.func @transform_7(%arg0: i32) -> (i32, i32) {
    %c0_i32 = arith.constant 0 : i32
    %c0_i32_0 = arith.constant 0 : i32
    %c0_i32_1 = arith.constant 0 : i32
    return %c0_i32, %c0_i32_0 : i32, i32
  }
  func.func @transform_8(%arg0: i32) -> (i32, i32) {
    %c0_i32 = arith.constant 0 : i32
    %c0_i32_0 = arith.constant 0 : i32
    %c0_i32_1 = arith.constant 0 : i32
    return %c0_i32, %c0_i32_0 : i32, i32
  }
  func.func @transform_9(%arg0: i32) -> (i32, i32) {
    %c0_i32 = arith.constant 0 : i32
    %c0_i32_0 = arith.constant 0 : i32
    return %arg0, %c0_i32 : i32, i32
  }
}

</mosaic_0001>

<bundles_post_ra>
// kernel: discriminator_forward.1
= control target key start
LH: loop header
LB: loop body
LE: loop exit
PB: predicated region body
PF: predicated region fallthrough
CT: control target
= control target key end

     0   :  { %s4968_s0 = inlined_call_operand.vmem [shape: bf16[8,256], index: 0, kind: input, shape index: {}]   ;;  %s4969_s1 = inlined_call_operand.vmem [shape: f32[8,1024], index: 1, kind: input, shape index: {}]   ;;  %s4970_s2 = inlined_call_operand.hbm [shape: bf16[256,1024], index: 2, kind: input, shape index: {}]   ;;  %s4971_s3 = inlined_call_operand.hbm [shape: bf16[1024,512], index: 3, kind: input, shape index: {}]   ;;  %s4972_s4 = inlined_call_operand.vmem [shape: f32[1,512], index: 4, kind: input, shape index: {}]   ;;  %s4973_s5 = inlined_call_operand.hbm [shape: bf16[512,256], index: 5, kind: input, shape index: {}]   ;;  %s4974_s6 = inlined_call_operand.vmem [shape: f32[1,256], index: 6, kind: input, shape index: {}]   ;;  %s4975_s7 = inlined_call_operand.vmem [shape: bf16[256,1], index: 7, kind: input, shape index: {}]   ;;  %s4976_s8 = inlined_call_operand.<no memory space> [shape: f32[1,1], index: 8, kind: input, shape index: {}]   ;;  %s4977_s9 = inlined_call_operand.vmem [shape: f32[8,1], index: 9, kind: output, shape index: {}]  }
   0x1   :  { %v14_v0 = vstv %s4976_s8 }
   0x2   :  { %15 = vst [vmem:[#allocation2] sm:$0x1] %v14_v0 }
   0x3   :  { %16 = vsyncpa [#allocation4], 0 }
   0x4   :  { %17 = vsyncpa [#allocation6], 0  ;;  %s4736_s11 = smov [#allocation5]   ;;  %s4666_s15 = scalar_lea.hbm %s4971_s3, 32768 }
   0x5   :  { %s39_s12 = sshll.u32 %s4736_s11, 4  ;;  %p4667_p0 = scmp.ne.s32.totalorder %s4971_s3, %s4666_s15  ;;  %s40_s12 = int_to_ptr.vmem [resolvable:$true] %s39_s12 }
   0x6   :  { %p4670_p1 = scmp.lt.u32.totalorder %s4666_s15, %s4971_s3 }
   0x8   :  { %p4672_p2 = pnand %p4670_p1, %p4667_p0 }
   0xa   :  { %4675 = shalt.err (!%p4672_p2)
}
   0xb   :  { %s4676_s8 = scalar_lea.vmem %s40_s12, 32768  ;;  %p4681_p4 = scmp.lt.s32.totalorder %s40_s12, %s40_s12 }
   0xc   :  { %p4677_p3 = scmp.ne.s32.totalorder %s40_s12, %s4676_s8  ;;  %p4682_p5 = scmp.lt.s32.totalorder %s4676_s8, %s4676_s8 }
   0xe   :  { %p4683_p6 = por %p4682_p5, %p4681_p4 }
  0x10   :  { %p4684_p7 = pnand %p4683_p6, %p4677_p3 }
  0x12   :  { %4687 = shalt.err (!%p4684_p7)
}
  0x13   :  { %s4737_s20 = smov 256   ;;  %s4738_s21 = smov 16  }
  0x14   :  { %45 = dma.hbm_to_vmem [thread:$0]  %s4971_s3, 32768, %s40_s12, [#allocation6], %s4737_s20, %s4737_s20, %s4738_s21  }
  0x15   :  { %s4739_s24 = smov [#allocation3]   ;;  %s4688_s28 = scalar_lea.hbm %s4970_s2, 16384 }
  0x16   :  { %s27_s25 = sshll.u32 %s4739_s24, 4  ;;  %p4689_p8 = scmp.ne.s32.totalorder %s4970_s2, %s4688_s28  ;;  %s28_s25 = int_to_ptr.vmem [resolvable:$true] %s27_s25 }
  0x17   :  { %p4692_p9 = scmp.lt.u32.totalorder %s4688_s28, %s4970_s2 }
  0x19   :  { %p4694_p10 = pnand %p4692_p9, %p4689_p8 }
  0x1b   :  { %4697 = shalt.err (!%p4694_p10)
}
  0x1c   :  { %s4698_s13 = scalar_lea.vmem %s28_s25, 16384  ;;  %p4703_p12 = scmp.lt.s32.totalorder %s28_s25, %s28_s25 }
  0x1d   :  { %p4699_p11 = scmp.ne.s32.totalorder %s28_s25, %s4698_s13  ;;  %p4704_p13 = scmp.lt.s32.totalorder %s4698_s13, %s4698_s13 }
  0x1f   :  { %p4705_p0 = por %p4704_p13, %p4703_p12 }
  0x21   :  { %p4706_p1 = pnand %p4705_p0, %p4699_p11 }
  0x23   :  { %4709 = shalt.err (!%p4706_p1)
}
  0x24   :  { %s4740_s3 = smov 512   ;;  %s4741_s12 = smov 32  }
  0x25   :  { %33 = dma.hbm_to_vmem [thread:$0]  %s4970_s2, 16384, %s28_s25, [#allocation4], %s4740_s3, %s4740_s3, %s4741_s12  }
  0x26   :  { %s4742_s16 = smov [#allocation7]   ;;  %s4710_s8 = scalar_lea.hbm %s4973_s5, 8192 }
  0x27   :  { %s53_s17 = sshll.u32 %s4742_s16, 4  ;;  %p4711_p2 = scmp.ne.s32.totalorder %s4973_s5, %s4710_s8  ;;  %s54_s17 = int_to_ptr.vmem [resolvable:$true] %s53_s17 }
  0x28   :  { %p4714_p3 = scmp.lt.u32.totalorder %s4710_s8, %s4973_s5 }
  0x2a   :  { %p4716_p4 = pnand %p4714_p3, %p4711_p2 }
  0x2c   :  { %4719 = shalt.err (!%p4716_p4)
}
  0x2d   :  { %s4720_s24 = scalar_lea.vmem %s54_s17, 8192  ;;  %p4725_p6 = scmp.lt.s32.totalorder %s54_s17, %s54_s17 }
  0x2e   :  { %p4721_p5 = scmp.ne.s32.totalorder %s54_s17, %s4720_s24  ;;  %p4726_p7 = scmp.lt.s32.totalorder %s4720_s24, %s4720_s24 }
  0x30   :  { %p4727_p8 = por %p4726_p7, %p4725_p6 }
  0x32   :  { %p4728_p9 = pnand %p4727_p8, %p4721_p5 }
  0x34   :  { %4731 = shalt.err (!%p4728_p9)
}
  0x35   :  { %s4743_s2 = smov 128   ;;  %s4744_s25 = smov 8  }
  0x36   :  { %59 = dma.hbm_to_vmem [thread:$0]  %s4973_s5, 8192, %s54_s17, [#allocation6], %s4743_s2, %s4743_s2, %s4744_s25  }
  0x37   :  { %4732 = dma.done.wait [#allocation4], 16384  }
  0x38   :  { %4733 = vsyncadd [#allocation4], 4294950912 }
  0x39   :  { %4734 = dma.done.wait [#allocation6], 40960  }
  0x3a   :  { %4735 = vsyncadd [#allocation6], 4294926336  ;;  %v77_v1 = vld [vmem:[#allocation3] sm:$0xff]  ;;  %v79_v32 = vld [vmem:[#allocation3 + $0x10] sm:$0xff]  ;;  %vm3624_vm14 = vcmask 7168  }
  0x3b   :  { %v81_v2 = vld [vmem:[#allocation3 + $0x20] sm:$0xff]  ;;  %v83_v33 = vld [vmem:[#allocation3 + $0x30] sm:$0xff] }
  0x3c   :  { %v85_v3 = vld [vmem:[#allocation3 + $0x40] sm:$0xff]  ;;  %v3635_v4 = vcombine.high %v77_v1, %v81_v2  ;;  %v3634_v5 = vcombine.low %v77_v1, %v81_v2  ;;  %v87_v34 = vld [vmem:[#allocation3 + $0x50] sm:$0xff]  ;;  %v3639_v36 = vcombine.high %v79_v32, %v83_v33  ;;  %v3638_v37 = vcombine.low %v79_v32, %v83_v33 }
  0x3d   :  { %v89_v6 = vld [vmem:[#allocation3 + $0x60] sm:$0xff]  ;;  %v91_v35 = vld [vmem:[#allocation3 + $0x70] sm:$0xff] }
  0x3e   :  { %v3643_v7 = vcombine.high %v85_v3, %v89_v6  ;;  %v93_v8 = vld [vmem:[#allocation3 + $0x80] sm:$0xff]  ;;  %860 = vmatprep.subr.bf16.mxu1 %v3635_v4  ;;  %v3642_v10 = vcombine.low %v85_v3, %v89_v6  ;;  %v3647_v38 = vcombine.high %v87_v34, %v91_v35  ;;  %v95_v40 = vld [vmem:[#allocation3 + $0x90] sm:$0xff]  ;;  %942 = vmatprep.subr.bf16.mxu0 %v3639_v36 }
  0x3f   :  { %v97_v9 = vld [vmem:[#allocation3 + $0xa0] sm:$0xff]  ;;  %861 = vmatpush1.bf16.msra.mxu1 %v3634_v5  ;;  %v99_v41 = vld [vmem:[#allocation3 + $0xb0] sm:$0xff]  ;;  %943 = vmatpush1.bf16.msra.mxu0 %v3638_v37  ;;  %v3646_v45 = vcombine.low %v87_v34, %v91_v35 }
  0x40   :  { %862 = vmatprep.subr.bf16.mxu1 %v3643_v7  ;;  %v3651_v11 = vcombine.high %v93_v8, %v97_v9  ;;  %v101_v12 = vld [vmem:[#allocation3 + $0xc0] sm:$0xff]  ;;  %v3650_v14 = vcombine.low %v93_v8, %v97_v9  ;;  %944 = vmatprep.subr.bf16.mxu0 %v3647_v38  ;;  %v3655_v46 = vcombine.high %v95_v40, %v99_v41  ;;  %v103_v48 = vld [vmem:[#allocation3 + $0xd0] sm:$0xff] }
  0x41   :  { %v105_v13 = vld [vmem:[#allocation3 + $0xe0] sm:$0xff]  ;;  %v107_v49 = vld [vmem:[#allocation3 + $0xf0] sm:$0xff]  ;;  %v3654_v53 = vcombine.low %v95_v40, %v99_v41 }
  0x42   :  { %v3659_v15 = vcombine.high %v101_v12, %v105_v13  ;;  %v109_v16 = vld [vmem:[#allocation3 + $0x100] sm:$0xff]  ;;  %v3658_v20 = vcombine.low %v101_v12, %v105_v13  ;;  %v3663_v54 = vcombine.high %v103_v48, %v107_v49  ;;  %v111_v56 = vld [vmem:[#allocation3 + $0x110] sm:$0xff]  ;;  %v3662_v61 = vcombine.low %v103_v48, %v107_v49 }
  0x43   :  { %863 = vmatpush1.bf16.msra.mxu1 %v3642_v10  ;;  %v113_v17 = vld [vmem:[#allocation3 + $0x120] sm:$0xff]  ;;  %945 = vmatpush1.bf16.msra.mxu0 %v3646_v45  ;;  %v115_v57 = vld [vmem:[#allocation3 + $0x130] sm:$0xff] }
  0x44   :  { %864 = vmatprep.subr.bf16.mxu1 %v3651_v11  ;;  %v4837_v18 = vld [vmem:[%s4968_s0] sm:$0xff]  ;;  %v3667_v21 = vcombine.high %v109_v16, %v113_v17  ;;  %v3666_v24 = vcombine.low %v109_v16, %v113_v17  ;;  %946 = vmatprep.subr.bf16.mxu0 %v3655_v46  ;;  %v3671_v62 = vcombine.high %v111_v56, %v115_v57  ;;  %v119_v0 = vld [vmem:[#allocation3 + $0x150] sm:$0xff] }
  0x45   :  { %v4841_v19 = vcombine.high %v4837_v18, %v4837_v18  ;;  %v117_v22 = vld [vmem:[#allocation3 + $0x140] sm:$0xff]  ;;  %v123_v1 = vld [vmem:[#allocation3 + $0x170] sm:$0xff]  ;;  %v3670_v5 = vcombine.low %v111_v56, %v115_v57  ;;  %v4847_v56 = vcombine.low %v4837_v18, %v4837_v18  ;;  %v102_v18 = vld [vmem:[#allocation3 + $0xc8] sm:$0xff] }
  0x46   :  { %v121_v23 = vld [vmem:[#allocation3 + $0x160] sm:$0xff]  ;;  %v3679_v6 = vcombine.high %v119_v0, %v123_v1  ;;  %v127_v10 = vld [vmem:[#allocation3 + $0x190] sm:$0xff]  ;;  %v3678_v13 = vcombine.low %v119_v0, %v123_v1 }
  0x47   :  { %865 = vmatpush1.bf16.msra.mxu1 %v3650_v14  ;;  %892 = vmatprep.mubr.bf16.mxu1 %v4841_v19  ;;  %v3675_v25 = vcombine.high %v117_v22, %v121_v23  ;;  %v125_v26 = vld [vmem:[#allocation3 + $0x180] sm:$0xff]  ;;  %v3674_v28 = vcombine.low %v117_v22, %v121_v23  ;;  %v131_v11 = vld [vmem:[#allocation3 + $0x1b0] sm:$0xff] }
  0x48   :  { %866 = vmatprep.subr.bf16.mxu1 %v3659_v15  ;;  %974 = vmatprep.mubr.bf16.mxu0 %v4841_v19  ;;  %v129_v27 = vld [vmem:[#allocation3 + $0x1a0] sm:$0xff]  ;;  %v3687_v14 = vcombine.high %v127_v10, %v131_v11  ;;  %v3686_v23 = vcombine.low %v127_v10, %v131_v11  ;;  %v151_v36 = vld [vmem:[#allocation3 + $0x250] sm:$0xff]  ;;  %v110_v10 = vld [vmem:[#allocation3 + $0x108] sm:$0xff] }
  0x49   :  { %v3683_v29 = vcombine.high %v125_v26, %v129_v27  ;;  %v133_v30 = vld [vmem:[#allocation3 + $0x1c0] sm:$0xff]  ;;  %v3682_v39 = vcombine.low %v125_v26, %v129_v27  ;;  %947 = vmatpush1.bf16.msra.mxu0 %v3654_v53  ;;  %v155_v37 = vld [vmem:[#allocation3 + $0x270] sm:$0xff] }
  0x4a   :  { %v137_v31 = vld [vmem:[#allocation3 + $0x1e0] sm:$0xff]  ;;  %948 = vmatprep.subr.bf16.mxu0 %v3663_v54  ;;  %v3711_v40 = vcombine.high %v151_v36, %v155_v37  ;;  %v163_v45 = vld [vmem:[#allocation3 + $0x2b0] sm:$0xff] }
  0x4b   :  { %867 = vmatpush1.bf16.msra.mxu1 %v3658_v20  ;;  %v3691_v42 = vcombine.high %v133_v30, %v137_v31  ;;  %v141_v43 = vld [vmem:[#allocation3 + $0x200] sm:$0xff]  ;;  %v3690_v47 = vcombine.low %v133_v30, %v137_v31  ;;  %v135_v20 = vld [vmem:[#allocation3 + $0x1d0] sm:$0xff] }
  0x4c   :  { %868 = vmatprep.subr.bf16.mxu1 %v3667_v21  ;;  %v145_v44 = vld [vmem:[#allocation3 + $0x220] sm:$0xff]  ;;  %v139_v21 = vld [vmem:[#allocation3 + $0x1f0] sm:$0xff] }
  0x4d   :  { %v3699_v50 = vcombine.high %v141_v43, %v145_v44  ;;  %v149_v51 = vld [vmem:[#allocation3 + $0x240] sm:$0xff]  ;;  %v3698_v55 = vcombine.low %v141_v43, %v145_v44  ;;  %949 = vmatpush1.bf16.msra.mxu0 %v3662_v61  ;;  %v3694_v31 = vcombine.low %v135_v20, %v139_v21  ;;  %v82_v43 = vld [vmem:[#allocation3 + $0x28] sm:$0xff]  ;;  %v159_v44 = vld [vmem:[#allocation3 + $0x290] sm:$0xff] }
  0x4e   :  { %v153_v52 = vld [vmem:[#allocation3 + $0x260] sm:$0xff]  ;;  %950 = vmatprep.subr.bf16.mxu0 %v3671_v62  ;;  %v3719_v48 = vcombine.high %v159_v44, %v163_v45  ;;  %v171_v53 = vld [vmem:[#allocation3 + $0x2f0] sm:$0xff] }
  0x4f   :  { %869 = vmatpush1.bf16.msra.mxu1 %v3666_v24  ;;  %v3707_v58 = vcombine.high %v149_v51, %v153_v52  ;;  %v157_v59 = vld [vmem:[#allocation3 + $0x280] sm:$0xff]  ;;  %v3706_v63 = vcombine.low %v149_v51, %v153_v52  ;;  %v3695_v24 = vcombine.high %v135_v20, %v139_v21  ;;  %v90_v51 = vld [vmem:[#allocation3 + $0x68] sm:$0xff]  ;;  %v167_v52 = vld [vmem:[#allocation3 + $0x2d0] sm:$0xff] }
  0x50   :  { %870 = vmatprep.subr.bf16.mxu1 %v3675_v25  ;;  %v161_v60 = vld [vmem:[#allocation3 + $0x2a0] sm:$0xff]  ;;  %v3727_v57 = vcombine.high %v167_v52, %v171_v53  ;;  %v179_v61 = vld [vmem:[#allocation3 + $0x330] sm:$0xff]  ;;  %v3726_v0 = vcombine.low %v167_v52, %v171_v53  ;;  %v118_v20 = vld [vmem:[#allocation3 + $0x148] sm:$0xff] }
  0x51   :  { %v3715_v2 = vcombine.high %v157_v59, %v161_v60  ;;  %v165_v3 = vld [vmem:[#allocation3 + $0x2c0] sm:$0xff]  ;;  %v3714_v7 = vcombine.low %v157_v59, %v161_v60  ;;  %951 = vmatpush1.bf16.msra.mxu0 %v3670_v5  ;;  %v94_v59 = vld [vmem:[#allocation3 + $0x88] sm:$0xff]  ;;  %v175_v60 = vld [vmem:[#allocation3 + $0x310] sm:$0xff] }
  0x52   :  { %v169_v4 = vld [vmem:[#allocation3 + $0x2e0] sm:$0xff]  ;;  %952 = vmatprep.subr.bf16.mxu0 %v3679_v6  ;;  %v3735_v1 = vcombine.high %v175_v60, %v179_v61  ;;  %v106_v6 = vld [vmem:[#allocation3 + $0xe8] sm:$0xff]  ;;  %v191_v11 = vld [vmem:[#allocation3 + $0x390] sm:$0xff] }
  0x53   :  { %871 = vmatpush1.bf16.msra.mxu1 %v3674_v28  ;;  %v173_v8 = vld [vmem:[#allocation3 + $0x300] sm:$0xff]  ;;  %v3723_v12 = vcombine.high %v165_v3, %v169_v4  ;;  %v3722_v15 = vcombine.low %v165_v3, %v169_v4  ;;  %v143_v28 = vld [vmem:[#allocation3 + $0x210] sm:$0xff]  ;;  %v158_v52 = vld [vmem:[#allocation3 + $0x288] sm:$0xff] }
  0x54   :  { %872 = vmatprep.subr.bf16.mxu1 %v3683_v29  ;;  %v177_v9 = vld [vmem:[#allocation3 + $0x320] sm:$0xff]  ;;  %v147_v29 = vld [vmem:[#allocation3 + $0x230] sm:$0xff]  ;;  %v162_v53 = vld [vmem:[#allocation3 + $0x2a8] sm:$0xff] }
  0x55   :  { %v181_v16 = vld [vmem:[#allocation3 + $0x340] sm:$0xff]  ;;  %v3731_v22 = vcombine.high %v173_v8, %v177_v9  ;;  %953 = vmatpush1.bf16.msra.mxu0 %v3678_v13  ;;  %v3730_v25 = vcombine.low %v173_v8, %v177_v9  ;;  %v3703_v32 = vcombine.high %v143_v28, %v147_v29  ;;  %v183_v3 = vld [vmem:[#allocation3 + $0x350] sm:$0xff]  ;;  %v3661_v13 = vcombine.high %v102_v18, %v106_v6 }
  0x56   :  { %v185_v17 = vld [vmem:[#allocation3 + $0x360] sm:$0xff]  ;;  %954 = vmatprep.subr.bf16.mxu0 %v3687_v14  ;;  %v187_v4 = vld [vmem:[#allocation3 + $0x370] sm:$0xff]  ;;  %v114_v14 = vld [vmem:[#allocation3 + $0x128] sm:$0xff] }
  0x57   :  { %873 = vmatpush1.bf16.msra.mxu1 %v3682_v39  ;;  %v189_v26 = vld [vmem:[#allocation3 + $0x380] sm:$0xff]  ;;  %v3739_v30 = vcombine.high %v181_v16, %v185_v17  ;;  %v3738_v33 = vcombine.low %v181_v16, %v185_v17  ;;  %v3702_v39 = vcombine.low %v143_v28, %v147_v29  ;;  %v3743_v8 = vcombine.high %v183_v3, %v187_v4  ;;  %v199_v21 = vld [vmem:[#allocation3 + $0x3d0] sm:$0xff]  ;;  %v126_v28 = vld [vmem:[#allocation3 + $0x188] sm:$0xff] }
  0x58   :  { %874 = vmatprep.subr.bf16.mxu1 %v3691_v42  ;;  %v193_v27 = vld [vmem:[#allocation3 + $0x3a0] sm:$0xff]  ;;  %v78_v42 = vld [vmem:[#allocation3 + $0x8] sm:$0xff]  ;;  %v3660_v17 = vcombine.low %v102_v18, %v106_v6 }
  0x59   :  { %955 = vmatpush1.bf16.msra.mxu0 %v3686_v23  ;;  %v197_v34 = vld [vmem:[#allocation3 + $0x3c0] sm:$0xff]  ;;  %v3747_v38 = vcombine.high %v189_v26, %v193_v27  ;;  %v3746_v41 = vcombine.low %v189_v26, %v193_v27  ;;  %v3637_v54 = vcombine.high %v78_v42, %v82_v43  ;;  %v3669_v23 = vcombine.high %v110_v10, %v114_v14  ;;  %v130_v29 = vld [vmem:[#allocation3 + $0x1a8] sm:$0xff] }
  0x5a   :  { %956 = vmatprep.subr.bf16.mxu0 %v3695_v24  ;;  %v201_v35 = vld [vmem:[#allocation3 + $0x3e0] sm:$0xff]  ;;  %v122_v24 = vld [vmem:[#allocation3 + $0x168] sm:$0xff]  ;;  %v3668_v27 = vcombine.low %v110_v10, %v114_v14 }
  0x5b   :  { %875 = vmatpush1.bf16.msra.mxu1 %v3690_v47  ;;  %v3755_v46 = vcombine.high %v197_v34, %v201_v35  ;;  %v3710_v47 = vcombine.low %v151_v36, %v155_v37  ;;  %v3754_v49 = vcombine.low %v197_v34, %v201_v35  ;;  %v134_v34 = vld [vmem:[#allocation3 + $0x1c8] sm:$0xff]  ;;  %v4166_v36 = vld [vmem:[#allocation5] ss:$16 sps:$4 sm:$0xff]   ;;  %v3685_v37 = vcombine.high %v126_v28, %v130_v29  ;;  %v4210_v10 = vld [vmem:[#allocation5 + $0xe4] ss:$16 sps:$4 sm:$0xff]  }
  0x5c   :  { %876 = vmatprep.subr.bf16.mxu1 %v3699_v50  ;;  %v86_v50 = vld [vmem:[#allocation3 + $0x48] sm:$0xff]  ;;  %v4196_v18 = vld [vmem:[#allocation5 + $0xa0] ss:$16 sps:$4 sm:$0xff]  }
  0x5d   :  { %957 = vmatpush1.bf16.msra.mxu0 %v3694_v31  ;;  %v3645_v62 = vcombine.high %v86_v50, %v90_v51  ;;  %v4168_v31 = vld [vmem:[#allocation5 + $0x4] ss:$16 sps:$4 sm:$0xff]   ;;  %v138_v35 = vld [vmem:[#allocation3 + $0x1e8] sm:$0xff]  ;;  %v4208_v14 = vld [vmem:[#allocation5 + $0xe0] ss:$16 sps:$4 sm:$0xff]  }
  0x5e   :  { %958 = vmatprep.subr.bf16.mxu0 %v3703_v32  ;;  %v182_v6 = vld [vmem:[#allocation3 + $0x348] sm:$0xff] }
  0x5f   :  { %877 = vmatpush1.bf16.msra.mxu1 %v3698_v55  ;;  %v3718_v55 = vcombine.low %v159_v44, %v163_v45  ;;  %v4180_v44 = vld [vmem:[#allocation5 + $0x44] ss:$16 sps:$4 sm:$0xff]   ;;  %v3692_v45 = vcombine.low %v134_v34, %v138_v35 }
  0x60   :  { %878 = vmatprep.subr.bf16.mxu1 %v3707_v58  ;;  %v3636_v58 = vcombine.low %v78_v42, %v82_v43  ;;  %v4172_v42 = vld [vmem:[#allocation5 + $0x20] ss:$16 sps:$4 sm:$0xff]   ;;  %v3693_v43 = vcombine.high %v134_v34, %v138_v35 }
  0x61   :  { %959 = vmatpush1.bf16.msra.mxu0 %v3702_v39  ;;  %v3684_v39 = vcombine.low %v126_v28, %v130_v29  ;;  %v4220_v28 = vld [vmem:[#allocation5 + $0x120] ss:$16 sps:$4 sm:$0xff]  }
  0x62   :  { %960 = vmatprep.subr.bf16.mxu0 %v3711_v40  ;;  %v142_v40 = vld [vmem:[#allocation3 + $0x208] sm:$0xff]  ;;  %v4226_v34 = vld [vmem:[#allocation5 + $0x140] ss:$16 sps:$4 sm:$0xff]  }
  0x63   :  { %879 = vmatpush1.bf16.msra.mxu1 %v3706_v63  ;;  %v98_v63 = vld [vmem:[#allocation3 + $0xa8] sm:$0xff] }
  0x64   :  { %880 = vmatprep.subr.bf16.mxu1 %v3715_v2  ;;  %v3644_v2 = vcombine.low %v86_v50, %v90_v51  ;;  %v3653_v5 = vcombine.high %v94_v59, %v98_v63  ;;  %v3652_v9 = vcombine.low %v94_v59, %v98_v63  ;;  %v4186_v50 = vld [vmem:[#allocation5 + $0x64] ss:$16 sps:$4 sm:$0xff]   ;;  %v166_v59 = vld [vmem:[#allocation3 + $0x2c8] sm:$0xff] }
  0x65   :  { %961 = vmatpush1.bf16.msra.mxu0 %v3710_v47  ;;  %v154_v47 = vld [vmem:[#allocation3 + $0x268] sm:$0xff]  ;;  %v4198_v63 = vld [vmem:[#allocation5 + $0xa4] ss:$16 sps:$4 sm:$0xff]  }
  0x66   :  { %962 = vmatprep.subr.bf16.mxu0 %v3719_v48  ;;  %v4178_v48 = vld [vmem:[#allocation5 + $0x40] ss:$16 sps:$4 sm:$0xff]  }
  0x67   :  { %881 = vmatpush1.bf16.msra.mxu1 %v3714_v7  ;;  %v3734_v7 = vcombine.low %v175_v60, %v179_v61  ;;  %v170_v60 = vld [vmem:[#allocation3 + $0x2e8] sm:$0xff]  ;;  %v4190_v61 = vld [vmem:[#allocation5 + $0x80] ss:$16 sps:$4 sm:$0xff]  }
  0x68   :  { %882 = vmatprep.subr.bf16.mxu1 %v3723_v12  ;;  %v195_v12 = vld [vmem:[#allocation3 + $0x3b0] sm:$0xff] }
  0x69   :  { %963 = vmatpush1.bf16.msra.mxu0 %v3718_v55  ;;  %v3751_v16 = vcombine.high %v191_v11, %v195_v12 }
  0x6a   :  { %964 = vmatprep.subr.bf16.mxu0 %v3727_v57  ;;  %v4192_v57 = vld [vmem:[#allocation5 + $0x84] ss:$16 sps:$4 sm:$0xff]  }
  0x6b   :  { %883 = vmatpush1.bf16.msra.mxu1 %v3722_v15  ;;  %v3742_v15 = vcombine.low %v183_v3, %v187_v4  ;;  %v3725_v3 = vcombine.high %v166_v59, %v170_v60  ;;  %v4204_v4 = vld [vmem:[#allocation5 + $0xc4] ss:$16 sps:$4 sm:$0xff]  }
  0x6c   :  { %884 = vmatprep.subr.bf16.mxu1 %v3731_v22  ;;  %v203_v22 = vld [vmem:[#allocation3 + $0x3f0] sm:$0xff] }
  0x6d   :  { %965 = vmatpush1.bf16.msra.mxu0 %v3726_v0  ;;  %v3759_v26 = vcombine.high %v199_v21, %v203_v22  ;;  %v3758_v32 = vcombine.low %v199_v21, %v203_v22  ;;  %v3716_v0 = vcombine.low %v158_v52, %v162_v53  ;;  %v202_v21 = vld [vmem:[#allocation3 + $0x3e8] sm:$0xff]  ;;  %v4214_v22 = vld [vmem:[#allocation5 + $0x100] ss:$16 sps:$4 sm:$0xff]  }
  0x6e   :  { %966 = vmatprep.subr.bf16.mxu0 %v3735_v1  ;;  %v174_v1 = vld [vmem:[#allocation3 + $0x308] sm:$0xff] }
  0x6f   :  { %885 = vmatpush1.bf16.msra.mxu1 %v3730_v25  ;;  %v3750_v25 = vcombine.low %v191_v11, %v195_v12  ;;  %v190_v12 = vld [vmem:[#allocation3 + $0x388] sm:$0xff] }
  0x70   :  { %886 = vmatprep.subr.bf16.mxu1 %v3739_v30  ;;  %v3677_v30 = vcombine.high %v118_v20, %v122_v24 }
  0x71   :  { %967 = vmatpush1.bf16.msra.mxu0 %v3734_v7  ;;  %v186_v7 = vld [vmem:[#allocation3 + $0x368] sm:$0xff] }
  0x72   :  { %968 = vmatprep.subr.bf16.mxu0 %v3743_v8  ;;  %v4202_v8 = vld [vmem:[#allocation5 + $0xc0] ss:$16 sps:$4 sm:$0xff]  }
  0x73   :  { %887 = vmatpush1.bf16.msra.mxu1 %v3738_v33  ;;  %v3676_v33 = vcombine.low %v118_v20, %v122_v24  ;;  %v198_v20 = vld [vmem:[#allocation3 + $0x3c8] sm:$0xff]  ;;  %v4222_v24 = vld [vmem:[#allocation5 + $0x124] ss:$16 sps:$4 sm:$0xff]  }
  0x74   :  { %888 = vmatprep.subr.bf16.mxu1 %v3747_v38  ;;  %v4174_v38 = vld [vmem:[#allocation5 + $0x24] ss:$16 sps:$4 sm:$0xff]   ;;  %v3757_v29 = vcombine.high %v198_v20, %v202_v21 }
  0x75   :  { %969 = vmatpush1.bf16.msra.mxu0 %v3742_v15  ;;  %v3741_v15 = vcombine.high %v182_v6, %v186_v7 }
  0x76   :  { %970 = vmatprep.subr.bf16.mxu0 %v3751_v16  ;;  %v4216_v16 = vld [vmem:[#allocation5 + $0x104] ss:$16 sps:$4 sm:$0xff]  }
  0x77   :  { %889 = vmatpush1.bf16.msra.mxu1 %v3746_v41  ;;  %v146_v41 = vld [vmem:[#allocation3 + $0x228] sm:$0xff] }
  0x78   :  { %890 = vmatprep.subr.bf16.mxu1 %v3755_v46  ;;  %v150_v46 = vld [vmem:[#allocation3 + $0x248] sm:$0xff]  ;;  %v3700_v51 = vcombine.low %v142_v40, %v146_v41 }
  0x79   :  { %971 = vmatpush1.bf16.msra.mxu0 %v3750_v25  ;;  %v3709_v55 = vcombine.high %v150_v46, %v154_v47 }
  0x7a   :  { %972 = vmatprep.subr.bf16.mxu0 %v3759_v26  ;;  %v80_v26 = vld [vmem:[#allocation3 + $0x18] sm:$0xff] }
  0x7b   :  { %891 = vmatpush1.bf16.msra.mxu1 %v3754_v49  ;;  %v3701_v49 = vcombine.high %v142_v40, %v146_v41  ;;  %v4232_v40 = vld [vmem:[#allocation5 + $0x160] ss:$16 sps:$4 sm:$0xff]  }
  0x7c   :  { %901 = vmatprep.subr.bf16.mxu1 %v3637_v54  ;;  %v4184_v54 = vld [vmem:[#allocation5 + $0x60] ss:$16 sps:$4 sm:$0xff]  }
  0x7d   :  { %973 = vmatpush1.bf16.msra.mxu0 %v3758_v32  ;;  %v88_v32 = vld [vmem:[#allocation3 + $0x58] sm:$0xff] }
  0x7e   :  { %893 = vmatmul.mubr.bf16.vlgmr.msra.gmra.mrb[0].mxu1 %v4847_v56  ;;  %2614 = vmatprep.subr.bf16.mxu0 %v4168_v31  ;;  %v3756_v31 = vcombine.low %v198_v20, %v202_v21 }
  0x7f   :  { %902 = vmatpush1.bf16.msra.mxu1 %v3636_v58  ;;  %933 = vmatprep.mubr.bf16.mxu1 %v4841_v19  ;;  %v3708_v58 = vcombine.low %v150_v46, %v154_v47  ;;  %v4238_v46 = vld [vmem:[#allocation5 + $0x180] ss:$16 sps:$4 sm:$0xff]  }
  0x80   :  { %903 = vmatprep.subr.bf16.mxu1 %v3645_v62  ;;  %975 = vmatmul.mubr.bf16.vlgmr.msra.gmra.mrb[0].mxu0 %v4847_v56  ;;  %v3717_v62 = vcombine.high %v158_v52, %v162_v53  ;;  %v4244_v52 = vld [vmem:[#allocation5 + $0x1a0] ss:$16 sps:$4 sm:$0xff]  }
  0x81   :  { %2615 = vmatpush1.bf16.msra.mxu0 %v4166_v36  ;;  %v4234_v36 = vld [vmem:[#allocation5 + $0x164] ss:$16 sps:$4 sm:$0xff]  }
  0x82   :  { %2616 = vmatprep.subr.bf16.mxu0 %v4174_v38  ;;  %v96_v38 = vld [vmem:[#allocation3 + $0x98] sm:$0xff] }
  0x83   :  { %904 = vmatpush1.bf16.msra.mxu1 %v3644_v2  ;;  %v178_v2 = vld [vmem:[#allocation3 + $0x328] sm:$0xff] }
  0x84   :  { %905 = vmatprep.subr.bf16.mxu1 %v3653_v5  ;;  %v3724_v5 = vcombine.low %v166_v59, %v170_v60  ;;  %v3732_v11 = vcombine.low %v174_v1, %v178_v2  ;;  %v128_v59 = vld [vmem:[#allocation3 + $0x198] sm:$0xff] }
  0x85   :  { %2617 = vmatpush1.bf16.msra.mxu0 %v4172_v42  ;;  %v4240_v42 = vld [vmem:[#allocation5 + $0x184] ss:$16 sps:$4 sm:$0xff]   ;;  %v132_v60 = vld [vmem:[#allocation3 + $0x1b8] sm:$0xff] }
  0x86   :  { %2618 = vmatprep.subr.bf16.mxu0 %v4180_v44  ;;  %v104_v44 = vld [vmem:[#allocation3 + $0xd8] sm:$0xff] }
  0x87   :  { %906 = vmatpush1.bf16.msra.mxu1 %v3652_v9  ;;  %v3733_v9 = vcombine.high %v174_v1, %v178_v2  ;;  %v4252_v1 = vld [vmem:[#allocation5 + $0x1c4] ss:$16 sps:$4 sm:$0xff]   ;;  %v140_v2 = vld [vmem:[#allocation3 + $0x1f8] sm:$0xff] }
  0x88   :  { %907 = vmatprep.subr.bf16.mxu1 %v3661_v13  ;;  %v194_v13 = vld [vmem:[#allocation3 + $0x3a8] sm:$0xff] }
  0x89   :  { %2619 = vmatpush1.bf16.msra.mxu0 %v4178_v48  ;;  %v3748_v25 = vcombine.low %v190_v12, %v194_v13  ;;  %v4246_v48 = vld [vmem:[#allocation5 + $0x1a4] ss:$16 sps:$4 sm:$0xff]  }
  0x8a   :  { %2620 = vmatprep.subr.bf16.mxu0 %v4186_v50  ;;  %v112_v50 = vld [vmem:[#allocation3 + $0x118] sm:$0xff] }
  0x8b   :  { %908 = vmatpush1.bf16.msra.mxu1 %v3660_v17  ;;  %v3740_v17 = vcombine.low %v182_v6, %v186_v7  ;;  %v4258_v6 = vld [vmem:[#allocation5 + $0x1e4] ss:$16 sps:$4 sm:$0xff]   ;;  %v148_v7 = vld [vmem:[#allocation3 + $0x238] sm:$0xff] }
  0x8c   :  { %909 = vmatprep.subr.bf16.mxu1 %v3669_v23  ;;  %v3749_v23 = vcombine.high %v190_v12, %v194_v13  ;;  %v152_v12 = vld [vmem:[#allocation3 + $0x258] sm:$0xff] }
  0x8d   :  { %2621 = vmatpush1.bf16.msra.mxu0 %v4184_v54  ;;  %v156_v13 = vld [vmem:[#allocation3 + $0x278] sm:$0xff] }
  0x8e   :  { %2622 = vmatprep.subr.bf16.mxu0 %v4192_v57  ;;  %v124_v57 = vld [vmem:[#allocation3 + $0x178] sm:$0xff]  ;;  %v3712_v20 = vcombine.low %v152_v12, %v156_v13 }
  0x8f   :  { %910 = vmatpush1.bf16.msra.mxu1 %v3668_v27  ;;  %v84_v27 = vld [vmem:[#allocation3 + $0x38] sm:$0xff] }
  0x90   :  { %911 = vmatprep.subr.bf16.mxu1 %v3677_v30  ;;  %v4228_v30 = vld [vmem:[#allocation5 + $0x144] ss:$16 sps:$4 sm:$0xff]   ;;  %v3641_v35 = vcombine.high %v80_v26, %v84_v27 }
  0x91   :  { %2623 = vmatpush1.bf16.msra.mxu0 %v4190_v61 }
  0x92   :  { %2624 = vmatprep.subr.bf16.mxu0 %v4198_v63  ;;  %v3689_v63 = vcombine.high %v128_v59, %v132_v60 }
  0x93   :  { %912 = vmatpush1.bf16.msra.mxu1 %v3676_v33  ;;  %v92_v33 = vld [vmem:[#allocation3 + $0x78] sm:$0xff] }
  0x94   :  { %913 = vmatprep.subr.bf16.mxu1 %v3685_v37  ;;  %v3640_v37 = vcombine.low %v80_v26, %v84_v27  ;;  %v3649_v41 = vcombine.high %v88_v32, %v92_v33  ;;  %v176_v26 = vld [vmem:[#allocation3 + $0x318] sm:$0xff] }
  0x95   :  { %2625 = vmatpush1.bf16.msra.mxu0 %v4196_v18  ;;  %v4250_v18 = vld [vmem:[#allocation5 + $0x1c0] ss:$16 sps:$4 sm:$0xff]   ;;  %v180_v27 = vld [vmem:[#allocation3 + $0x338] sm:$0xff] }
  0x96   :  { %2626 = vmatprep.subr.bf16.mxu0 %v4204_v4 }
  0x97   :  { %914 = vmatpush1.bf16.msra.mxu1 %v3684_v39  ;;  %v100_v39 = vld [vmem:[#allocation3 + $0xb8] sm:$0xff] }
  0x98   :  { %915 = vmatprep.subr.bf16.mxu1 %v3693_v43  ;;  %v3648_v43 = vcombine.low %v88_v32, %v92_v33  ;;  %v3657_v47 = vcombine.high %v96_v38, %v100_v39  ;;  %v3736_v32 = vcombine.low %v176_v26, %v180_v27 }
  0x99   :  { %2627 = vmatpush1.bf16.msra.mxu0 %v4202_v8  ;;  %v4256_v8 = vld [vmem:[#allocation5 + $0x1e0] ss:$16 sps:$4 sm:$0xff]  }
  0x9a   :  { %2628 = vmatprep.subr.bf16.mxu0 %v4210_v10 }
  0x9b   :  { %916 = vmatpush1.bf16.msra.mxu1 %v3692_v45  ;;  %v108_v45 = vld [vmem:[#allocation3 + $0xf8] sm:$0xff] }
  0x9c   :  { %917 = vmatprep.subr.bf16.mxu1 %v3701_v49  ;;  %v3656_v49 = vcombine.low %v96_v38, %v100_v39  ;;  %v3665_v53 = vcombine.high %v104_v44, %v108_v45  ;;  %v3664_v54 = vcombine.low %v104_v44, %v108_v45  ;;  %v200_v38 = vld [vmem:[#allocation3 + $0x3d8] sm:$0xff] }
  0x9d   :  { %2629 = vmatpush1.bf16.msra.mxu0 %v4208_v14  ;;  %v204_v39 = vld [vmem:[#allocation3 + $0x3f8] sm:$0xff] }
  0x9e   :  { %2630 = vmatprep.subr.bf16.mxu0 %v4216_v16  ;;  %v160_v16 = vld [vmem:[#allocation3 + $0x298] sm:$0xff] }
  0x9f   :  { %918 = vmatpush1.bf16.msra.mxu1 %v3700_v51  ;;  %v116_v51 = vld [vmem:[#allocation3 + $0x138] sm:$0xff] }
  0xa0   :  { %919 = vmatprep.subr.bf16.mxu1 %v3709_v55  ;;  %v120_v55 = vld [vmem:[#allocation3 + $0x158] sm:$0xff] }
  0xa1   :  { %2631 = vmatpush1.bf16.msra.mxu0 %v4214_v22  ;;  %v3681_v61 = vcombine.high %v120_v55, %v124_v57  ;;  %v168_v22 = vld [vmem:[#allocation3 + $0x2d8] sm:$0xff] }
  0xa2   :  { %2632 = vmatprep.subr.bf16.mxu0 %v4222_v24  ;;  %v4169_v44 = vld [vmem:[#allocation5 + $0x8] ss:$16 sps:$4 sm:$0xff]   ;;  %v4177_v45 = vld [vmem:[#allocation5 + $0x2c] ss:$16 sps:$4 sm:$0xff]  }
  0xa3   :  { %920 = vmatpush1.bf16.msra.mxu1 %v3708_v58  ;;  %v3672_v58 = vcombine.low %v112_v50, %v116_v51 }
  0xa4   :  { %921 = vmatprep.subr.bf16.mxu1 %v3717_v62  ;;  %v3680_v62 = vcombine.low %v120_v55, %v124_v57  ;;  %v4205_v55 = vld [vmem:[#allocation5 + $0xc8] ss:$16 sps:$4 sm:$0xff]   ;;  %v4213_v57 = vld [vmem:[#allocation5 + $0xec] ss:$16 sps:$4 sm:$0xff]  }
  0xa5   :  { %2633 = vmatpush1.bf16.msra.mxu0 %v4220_v28 }
  0xa6   :  { %2634 = vmatprep.subr.bf16.mxu0 %v4228_v30  ;;  %v184_v30 = vld [vmem:[#allocation3 + $0x358] sm:$0xff] }
  0xa7   :  { %922 = vmatpush1.bf16.msra.mxu1 %v3716_v0  ;;  %v136_v0 = vld [vmem:[#allocation3 + $0x1d8] sm:$0xff] }
  0xa8   :  { %923 = vmatprep.subr.bf16.mxu1 %v3725_v3  ;;  %v3688_v3 = vcombine.low %v128_v59, %v132_v60  ;;  %v3697_v4 = vcombine.high %v136_v0, %v140_v2  ;;  %v4217_v59 = vld [vmem:[#allocation5 + $0x108] ss:$16 sps:$4 sm:$0xff]   ;;  %v4225_v60 = vld [vmem:[#allocation5 + $0x12c] ss:$16 sps:$4 sm:$0xff]  }
  0xa9   :  { %2635 = vmatpush1.bf16.msra.mxu0 %v4226_v34  ;;  %v192_v34 = vld [vmem:[#allocation3 + $0x398] sm:$0xff] }
  0xaa   :  { %2636 = vmatprep.subr.bf16.mxu0 %v4234_v36 }
  0xab   :  { %924 = vmatpush1.bf16.msra.mxu1 %v3724_v5  ;;  %v144_v5 = vld [vmem:[#allocation3 + $0x218] sm:$0xff] }
  0xac   :  { %925 = vmatprep.subr.bf16.mxu1 %v3733_v9  ;;  %v3696_v9 = vcombine.low %v136_v0, %v140_v2  ;;  %v3705_v10 = vcombine.high %v144_v5, %v148_v7  ;;  %v3704_v14 = vcombine.low %v144_v5, %v148_v7  ;;  %v4237_v0 = vld [vmem:[#allocation5 + $0x16c] ss:$16 sps:$4 sm:$0xff]  }
  0xad   :  { %2637 = vmatpush1.bf16.msra.mxu0 %v4232_v40  ;;  %v4243_v2 = vld [vmem:[#allocation5 + $0x18c] ss:$16 sps:$4 sm:$0xff]  }
  0xae   :  { %2638 = vmatprep.subr.bf16.mxu0 %v4240_v42  ;;  %v3760_v42 = vcombine.low %v200_v38, %v204_v39  ;;  %v4255_v5 = vld [vmem:[#allocation5 + $0x1cc] ss:$16 sps:$4 sm:$0xff]  }
  0xaf   :  { %926 = vmatpush1.bf16.msra.mxu1 %v3732_v11  ;;  %v4264_v11 = vld [vmem:[#allocation5 + $0x204] ss:$16 sps:$4 sm:$0xff]   ;;  %v4261_v7 = vld [vmem:[#allocation5 + $0x1ec] ss:$16 sps:$4 sm:$0xff]  }
  0xb0   :  { %927 = vmatprep.subr.bf16.mxu1 %v3741_v15  ;;  %v3713_v15 = vcombine.high %v152_v12, %v156_v13 }
  0xb1   :  { %2639 = vmatpush1.bf16.msra.mxu0 %v4238_v46  ;;  %v4175_v46 = vld [vmem:[#allocation5 + $0x28] ss:$16 sps:$4 sm:$0xff]  }
  0xb2   :  { %2640 = vmatprep.subr.bf16.mxu0 %v4246_v48  ;;  %v4181_v48 = vld [vmem:[#allocation5 + $0x48] ss:$16 sps:$4 sm:$0xff]  }
  0xb3   :  { %928 = vmatpush1.bf16.msra.mxu1 %v3740_v17  ;;  %v164_v17 = vld [vmem:[#allocation3 + $0x2b8] sm:$0xff] }
  0xb4   :  { %929 = vmatprep.subr.bf16.mxu1 %v3749_v23  ;;  %v3721_v21 = vcombine.high %v160_v16, %v164_v17  ;;  %v172_v23 = vld [vmem:[#allocation3 + $0x2f8] sm:$0xff]  ;;  %v3720_v24 = vcombine.low %v160_v16, %v164_v17 }
  0xb5   :  { %2641 = vmatpush1.bf16.msra.mxu0 %v4244_v52  ;;  %v3728_v28 = vcombine.low %v168_v22, %v172_v23  ;;  %v4193_v52 = vld [vmem:[#allocation5 + $0x88] ss:$16 sps:$4 sm:$0xff]  }
  0xb6   :  { %2642 = vmatprep.subr.bf16.mxu0 %v4252_v1  ;;  %v4235_v1 = vld [vmem:[#allocation5 + $0x168] ss:$16 sps:$4 sm:$0xff]  }
  0xb7   :  { %930 = vmatpush1.bf16.msra.mxu1 %v3748_v25  ;;  %v3729_v25 = vcombine.high %v168_v22, %v172_v23 }
  0xb8   :  { %931 = vmatprep.subr.bf16.mxu1 %v3757_v29  ;;  %v3737_v29 = vcombine.high %v176_v26, %v180_v27  ;;  %v4265_v26 = vld [vmem:[#allocation5 + $0x208] ss:$16 sps:$4 sm:$0xff]  }
  0xb9   :  { %2643 = vmatpush1.bf16.msra.mxu0 %v4250_v18  ;;  %v4241_v18 = vld [vmem:[#allocation5 + $0x188] ss:$16 sps:$4 sm:$0xff]  }
  0xba   :  { %2644 = vmatprep.subr.bf16.mxu0 %v4258_v6  ;;  %v4253_v6 = vld [vmem:[#allocation5 + $0x1c8] ss:$16 sps:$4 sm:$0xff]  }
  0xbb   :  { %932 = vmatpush1.bf16.msra.mxu1 %v3756_v31  ;;  %v188_v31 = vld [vmem:[#allocation3 + $0x378] sm:$0xff] }
  0xbc   :  { %983 = vmatprep.subr.bf16.mxu1 %v3641_v35  ;;  %v3745_v33 = vcombine.high %v184_v30, %v188_v31  ;;  %v196_v35 = vld [vmem:[#allocation3 + $0x3b8] sm:$0xff]  ;;  %v3744_v36 = vcombine.low %v184_v30, %v188_v31  ;;  %v4268_v30 = vld [vmem:[#allocation5 + $0x220] ss:$16 sps:$4 sm:$0xff]  }
  0xbd   :  { %2645 = vmatpush1.bf16.msra.mxu0 %v4256_v8  ;;  %v3752_v40 = vcombine.low %v192_v34, %v196_v35  ;;  %v4259_v8 = vld [vmem:[#allocation5 + $0x1e8] ss:$16 sps:$4 sm:$0xff]  }
  0xbe   :  { %934 = vmatmul.mubr.bf16.vlgmr.msra.gmra.mrb[4].mxu1 %v4847_v56  ;;  %2655 = vmatprep.subr.bf16.mxu0 %v4264_v11  ;;  %v206_v11 = vld [vmem:[%s4969_s1 + $0x8] sm:$0xff] }
  0xbf   :  { %984 = vmatpush1.bf16.msra.mxu1 %v3640_v37  ;;  %1015 = vmatprep.mubr.bf16.mxu1 %v4841_v19  ;;  %v3673_v19 = vcombine.high %v112_v50, %v116_v51  ;;  %v3753_v37 = vcombine.high %v192_v34, %v196_v35  ;;  %v4187_v50 = vld [vmem:[#allocation5 + $0x68] ss:$16 sps:$4 sm:$0xff]   ;;  %v4195_v51 = vld [vmem:[#allocation5 + $0x8c] ss:$16 sps:$4 sm:$0xff]   ;;  %v4274_v34 = vld [vmem:[#allocation5 + $0x240] ss:$16 sps:$4 sm:$0xff]  }
  0xc0   :  { %985 = vmatprep.subr.bf16.mxu1 %v3649_v41  ;;  %v3761_v41 = vcombine.high %v200_v38, %v204_v39  ;;  %v4271_v31 = vld [vmem:[#allocation5 + $0x228] ss:$16 sps:$4 sm:$0xff]   ;;  %v4280_v38 = vld [vmem:[#allocation5 + $0x260] ss:$16 sps:$4 sm:$0xff]  }
  0xc1   :  { %v4277_v35 = vld [vmem:[#allocation5 + $0x248] ss:$16 sps:$4 sm:$0xff]  }
  0xc2   :  { %v4283_v39 = vld [vmem:[#allocation5 + $0x268] ss:$16 sps:$4 sm:$0xff]  }
  0xc3   :  { %986 = vmatpush1.bf16.msra.mxu1 %v3648_v43  ;;  %v4171_v43 = vld [vmem:[#allocation5 + $0xc] ss:$16 sps:$4 sm:$0xff]  }
  0xc4   :  { %987 = vmatprep.subr.bf16.mxu1 %v3657_v47  ;;  %v4183_v47 = vld [vmem:[#allocation5 + $0x4c] ss:$16 sps:$4 sm:$0xff]  }
  0xc7   :  { %988 = vmatpush1.bf16.msra.mxu1 %v3656_v49  ;;  %v4189_v49 = vld [vmem:[#allocation5 + $0x6c] ss:$16 sps:$4 sm:$0xff]  }
  0xc8   :  { %989 = vmatprep.subr.bf16.mxu1 %v3665_v53  ;;  %v4201_v53 = vld [vmem:[#allocation5 + $0xac] ss:$16 sps:$4 sm:$0xff]  }
  0xcb   :  { %990 = vmatpush1.bf16.msra.mxu1 %v3664_v54  ;;  %v4199_v54 = vld [vmem:[#allocation5 + $0xa8] ss:$16 sps:$4 sm:$0xff]  }
  0xcc   :  { %991 = vmatprep.subr.bf16.mxu1 %v3673_v19  ;;  %v4211_v19 = vld [vmem:[#allocation5 + $0xe8] ss:$16 sps:$4 sm:$0xff]  }
  0xcf   :  { %992 = vmatpush1.bf16.msra.mxu1 %v3672_v58  ;;  %v4219_v58 = vld [vmem:[#allocation5 + $0x10c] ss:$16 sps:$4 sm:$0xff]  }
  0xd0   :  { %993 = vmatprep.subr.bf16.mxu1 %v3681_v61  ;;  %v4223_v61 = vld [vmem:[#allocation5 + $0x128] ss:$16 sps:$4 sm:$0xff]  }
  0xd3   :  { %994 = vmatpush1.bf16.msra.mxu1 %v3680_v62  ;;  %v4231_v62 = vld [vmem:[#allocation5 + $0x14c] ss:$16 sps:$4 sm:$0xff]  }
  0xd4   :  { %995 = vmatprep.subr.bf16.mxu1 %v3689_v63  ;;  %v4229_v63 = vld [vmem:[#allocation5 + $0x148] ss:$16 sps:$4 sm:$0xff]  }
  0xd7   :  { %996 = vmatpush1.bf16.msra.mxu1 %v3688_v3  ;;  %v4249_v3 = vld [vmem:[#allocation5 + $0x1ac] ss:$16 sps:$4 sm:$0xff]  }
  0xd8   :  { %997 = vmatprep.subr.bf16.mxu1 %v3697_v4  ;;  %v4247_v4 = vld [vmem:[#allocation5 + $0x1a8] ss:$16 sps:$4 sm:$0xff]  }
  0xdb   :  { %998 = vmatpush1.bf16.msra.mxu1 %v3696_v9  ;;  %v4267_v9 = vld [vmem:[#allocation5 + $0x20c] ss:$16 sps:$4 sm:$0xff]  }
  0xdc   :  { %999 = vmatprep.subr.bf16.mxu1 %v3705_v10  ;;  %v205_v10 = vld [vmem:[%s4969_s1] sm:$0xff] }
  0xdf   :  { %1000 = vmatpush1.bf16.msra.mxu1 %v3704_v14 }
  0xe0   :  { %1001 = vmatprep.subr.bf16.mxu1 %v3713_v15 }
  0xe3   :  { %1002 = vmatpush1.bf16.msra.mxu1 %v3712_v20 }
  0xe4   :  { %1003 = vmatprep.subr.bf16.mxu1 %v3721_v21 }
  0xe7   :  { %1004 = vmatpush1.bf16.msra.mxu1 %v3720_v24 }
  0xe8   :  { %1005 = vmatprep.subr.bf16.mxu1 %v3729_v25  ;;  %v4262_v25 = vld [vmem:[#allocation5 + $0x200] ss:$16 sps:$4 sm:$0xff]  }
  0xeb   :  { %1006 = vmatpush1.bf16.msra.mxu1 %v3728_v28  ;;  %v4270_v28 = vld [vmem:[#allocation5 + $0x224] ss:$16 sps:$4 sm:$0xff]  }
  0xec   :  { %1007 = vmatprep.subr.bf16.mxu1 %v3737_v29  ;;  %v4273_v29 = vld [vmem:[#allocation5 + $0x22c] ss:$16 sps:$4 sm:$0xff]  }
  0xef   :  { %1008 = vmatpush1.bf16.msra.mxu1 %v3736_v32  ;;  %v4276_v32 = vld [vmem:[#allocation5 + $0x244] ss:$16 sps:$4 sm:$0xff]  }
  0xf0   :  { %1009 = vmatprep.subr.bf16.mxu1 %v3745_v33  ;;  %v4279_v33 = vld [vmem:[#allocation5 + $0x24c] ss:$16 sps:$4 sm:$0xff]  }
  0xf3   :  { %1010 = vmatpush1.bf16.msra.mxu1 %v3744_v36  ;;  %v4282_v36 = vld [vmem:[#allocation5 + $0x264] ss:$16 sps:$4 sm:$0xff]  }
  0xf4   :  { %1011 = vmatprep.subr.bf16.mxu1 %v3753_v37  ;;  %v4285_v37 = vld [vmem:[#allocation5 + $0x26c] ss:$16 sps:$4 sm:$0xff]  }
  0xf7   :  { %1012 = vmatpush1.bf16.msra.mxu1 %v3752_v40  ;;  %v4288_v40 = vld [vmem:[#allocation5 + $0x284] ss:$16 sps:$4 sm:$0xff]  }
  0xf8   :  { %1013 = vmatprep.subr.bf16.mxu1 %v3761_v41  ;;  %v4291_v41 = vld [vmem:[#allocation5 + $0x28c] ss:$16 sps:$4 sm:$0xff]  }
  0xfb   :  { %1014 = vmatpush1.bf16.msra.mxu1 %v3760_v42 }
  0xfc   :  { %2778 = vmatprep.subr.bf16.mxu1 %v4171_v43  ;;  %v4286_v43 = vld [vmem:[#allocation5 + $0x280] ss:$16 sps:$4 sm:$0xff]  }
  0xfe   :  { %1016 = vmatmul.mubr.bf16.vlgmr.msra.gmra.mrb[8].mxu1 %v4847_v56  ;;  %v4207_v56 = vld [vmem:[#allocation5 + $0xcc] ss:$16 sps:$4 sm:$0xff]  }
  0xff   :  { %2779 = vmatpush1.bf16.msra.mxu1 %v4169_v44  ;;  %v4289_v44 = vld [vmem:[#allocation5 + $0x288] ss:$16 sps:$4 sm:$0xff]  }
 0x100   :  { %2780 = vmatprep.subr.bf16.mxu1 %v4177_v45 }
 0x103   :  { %2781 = vmatpush1.bf16.msra.mxu1 %v4175_v46  ;;  %v4294_v46 = vld [vmem:[#allocation5 + $0x2a4] ss:$16 sps:$4 sm:$0xff]  }
 0x104   :  { %2782 = vmatprep.subr.bf16.mxu1 %v4183_v47  ;;  %v4297_v47 = vld [vmem:[#allocation5 + $0x2ac] ss:$16 sps:$4 sm:$0xff]  }
 0x107   :  { %2783 = vmatpush1.bf16.msra.mxu1 %v4181_v48 }
 0x108   :  { %2784 = vmatprep.subr.bf16.mxu1 %v4189_v49 }
 0x10b   :  { %2785 = vmatpush1.bf16.msra.mxu1 %v4187_v50  ;;  %v4292_v50 = vld [vmem:[#allocation5 + $0x2a0] ss:$16 sps:$4 sm:$0xff]  }
 0x10c   :  { %2786 = vmatprep.subr.bf16.mxu1 %v4195_v51  ;;  %v4295_v51 = vld [vmem:[#allocation5 + $0x2a8] ss:$16 sps:$4 sm:$0xff]  }
 0x10f   :  { %2787 = vmatpush1.bf16.msra.mxu1 %v4193_v52  ;;  %v4300_v52 = vld [vmem:[#allocation5 + $0x2c4] ss:$16 sps:$4 sm:$0xff]  }
 0x110   :  { %2788 = vmatprep.subr.bf16.mxu1 %v4201_v53  ;;  %v4303_v53 = vld [vmem:[#allocation5 + $0x2cc] ss:$16 sps:$4 sm:$0xff]  }
 0x113   :  { %2789 = vmatpush1.bf16.msra.mxu1 %v4199_v54  ;;  %v4298_v54 = vld [vmem:[#allocation5 + $0x2c0] ss:$16 sps:$4 sm:$0xff]  }
 0x114   :  { %2790 = vmatprep.subr.bf16.mxu1 %v4207_v56  ;;  %v4301_v56 = vld [vmem:[#allocation5 + $0x2c8] ss:$16 sps:$4 sm:$0xff]  }
 0x117   :  { %2791 = vmatpush1.bf16.msra.mxu1 %v4205_v55  ;;  %v4306_v55 = vld [vmem:[#allocation5 + $0x2e4] ss:$16 sps:$4 sm:$0xff]  }
 0x118   :  { %2792 = vmatprep.subr.bf16.mxu1 %v4213_v57  ;;  %v4309_v57 = vld [vmem:[#allocation5 + $0x2ec] ss:$16 sps:$4 sm:$0xff]  }
 0x11b   :  { %2793 = vmatpush1.bf16.msra.mxu1 %v4211_v19  ;;  %v4304_v19 = vld [vmem:[#allocation5 + $0x2e0] ss:$16 sps:$4 sm:$0xff]  }
 0x11c   :  { %2794 = vmatprep.subr.bf16.mxu1 %v4219_v58  ;;  %v4307_v58 = vld [vmem:[#allocation5 + $0x2e8] ss:$16 sps:$4 sm:$0xff]  }
 0x11f   :  { %2795 = vmatpush1.bf16.msra.mxu1 %v4217_v59  ;;  %v4312_v59 = vld [vmem:[#allocation5 + $0x304] ss:$16 sps:$4 sm:$0xff]  }
 0x120   :  { %2796 = vmatprep.subr.bf16.mxu1 %v4225_v60  ;;  %v4315_v60 = vld [vmem:[#allocation5 + $0x30c] ss:$16 sps:$4 sm:$0xff]  }
 0x123   :  { %2797 = vmatpush1.bf16.msra.mxu1 %v4223_v61  ;;  %v4310_v61 = vld [vmem:[#allocation5 + $0x300] ss:$16 sps:$4 sm:$0xff]  }
 0x124   :  { %2798 = vmatprep.subr.bf16.mxu1 %v4231_v62  ;;  %v4313_v62 = vld [vmem:[#allocation5 + $0x308] ss:$16 sps:$4 sm:$0xff]  }
 0x127   :  { %2799 = vmatpush1.bf16.msra.mxu1 %v4229_v63  ;;  %v4318_v63 = vld [vmem:[#allocation5 + $0x324] ss:$16 sps:$4 sm:$0xff]  }
 0x128   :  { %2800 = vmatprep.subr.bf16.mxu1 %v4237_v0  ;;  %v4321_v0 = vld [vmem:[#allocation5 + $0x32c] ss:$16 sps:$4 sm:$0xff]  }
 0x12b   :  { %2801 = vmatpush1.bf16.msra.mxu1 %v4235_v1  ;;  %v4316_v1 = vld [vmem:[#allocation5 + $0x320] ss:$16 sps:$4 sm:$0xff]  }
 0x12c   :  { %2802 = vmatprep.subr.bf16.mxu1 %v4243_v2  ;;  %v4319_v2 = vld [vmem:[#allocation5 + $0x328] ss:$16 sps:$4 sm:$0xff]  }
 0x12f   :  { %2803 = vmatpush1.bf16.msra.mxu1 %v4241_v18  ;;  %v4324_v18 = vld [vmem:[#allocation5 + $0x344] ss:$16 sps:$4 sm:$0xff]  }
 0x130   :  { %2804 = vmatprep.subr.bf16.mxu1 %v4249_v3  ;;  %v4327_v3 = vld [vmem:[#allocation5 + $0x34c] ss:$16 sps:$4 sm:$0xff]  }
 0x133   :  { %2805 = vmatpush1.bf16.msra.mxu1 %v4247_v4  ;;  %v4322_v4 = vld [vmem:[#allocation5 + $0x340] ss:$16 sps:$4 sm:$0xff]  }
 0x134   :  { %2806 = vmatprep.subr.bf16.mxu1 %v4255_v5  ;;  %v4325_v5 = vld [vmem:[#allocation5 + $0x348] ss:$16 sps:$4 sm:$0xff]  }
 0x137   :  { %2807 = vmatpush1.bf16.msra.mxu1 %v4253_v6  ;;  %v4330_v6 = vld [vmem:[#allocation5 + $0x364] ss:$16 sps:$4 sm:$0xff]  }
 0x138   :  { %2808 = vmatprep.subr.bf16.mxu1 %v4261_v7  ;;  %v4333_v7 = vld [vmem:[#allocation5 + $0x36c] ss:$16 sps:$4 sm:$0xff]  }
 0x13b   :  { %2809 = vmatpush1.bf16.msra.mxu1 %v4259_v8  ;;  %v4328_v8 = vld [vmem:[#allocation5 + $0x360] ss:$16 sps:$4 sm:$0xff]  }
 0x13c   :  { %2819 = vmatprep.subr.bf16.mxu1 %v4267_v9  ;;  %v4331_v9 = vld [vmem:[#allocation5 + $0x368] ss:$16 sps:$4 sm:$0xff]  }
 0x151   :  { %v894_v12 = vpop.f32.mrb[0].mxu1 }
 0x152   :  { %v895_v13 = vadd.f32 %v894_v12, %v205_v10  ;;  %v896_v14 = vpop.f32.mrb[1].mxu1  ;;  %v4336_v10 = vld [vmem:[#allocation5 + $0x384] ss:$16 sps:$4 sm:$0xff]   ;;  %v4334_v12 = vld [vmem:[#allocation5 + $0x380] ss:$16 sps:$4 sm:$0xff]  }
 0x153   :  { %v897_v15 = vadd.f32 %v896_v14, %v206_v11  ;;  %v898_v16 = vpop.f32.mrb[2].mxu1  ;;  %v4861_v42 = vpop.f32.mrb[0].mxu0  ;;  %v4339_v11 = vld [vmem:[#allocation5 + $0x38c] ss:$16 sps:$4 sm:$0xff]   ;;  %v4342_v14 = vld [vmem:[#allocation5 + $0x3a4] ss:$16 sps:$4 sm:$0xff]  }
 0x154   :  { %vm1024_vm0 = vcmp.gt.f32.partialorder %v895_v13, 0.0  ;;  %v1032_v17 = vmul.f32 0.2, %v895_v13  ;;  %v899_v20 = vpop.f32.mrb[3].mxu1  ;;  %v4863_v45 = vpop.f32.mrb[1].mxu0 }
 0x155   :  { %vm1025_vm1 = vcmp.gt.f32.partialorder %v897_v15, 0.0  ;;  %v1033_v21 = vmul.f32 0.2, %v897_v15  ;;  %v980_v48 = vpop.f32.mrb[2].mxu0  ;;  %v4340_v16 = vld [vmem:[#allocation5 + $0x3a0] ss:$16 sps:$4 sm:$0xff]  }
 0x156   :  { %v1040_v22 = vsel %vm1024_vm0, %v895_v13, %v1032_v17  ;;  %v981_v49 = vpop.f32.mrb[3].mxu0  ;;  %v4337_v13 = vld [vmem:[#allocation5 + $0x388] ss:$16 sps:$4 sm:$0xff]   ;;  %v4358_v48 = vld [vmem:[#allocation5 + $0x400] ss:$16 sps:$4 sm:$0xff]  }
 0x157   :  { %v1041_v23 = vsel %vm1025_vm1, %v897_v15, %v1033_v21  ;;  %v1048_v27 = vpack.c.bf16 %v1040_v22, %v1040_v22  ;;  %v4345_v15 = vld [vmem:[#allocation5 + $0x3ac] ss:$16 sps:$4 sm:$0xff]   ;;  %v4343_v17 = vld [vmem:[#allocation5 + $0x3a8] ss:$16 sps:$4 sm:$0xff]   ;;  %v4348_v21 = vld [vmem:[#allocation5 + $0x3c4] ss:$16 sps:$4 sm:$0xff]  }
 0x158   :  { %v1049_v24 = vpack.c.bf16 %v1041_v23, %v1041_v23  ;;  %v210_v20 = vld [vmem:[%s4969_s1 + $0x28] sm:$0xff]  ;;  %v207_v23 = vld [vmem:[%s4969_s1 + $0x10] sm:$0xff] }
 0x159   :  { %v4351_v22 = vld [vmem:[#allocation5 + $0x3cc] ss:$16 sps:$4 sm:$0xff]   ;;  %v4361_v49 = vld [vmem:[#allocation5 + $0x408] ss:$16 sps:$4 sm:$0xff]  }
 0x15a   :  { %2646 = vmatprep.mubr.bf16.mxu0 %v1049_v24  ;;  %2810 = vmatprep.mubr.bf16.mxu1 %v1049_v24  ;;  %v979_v24 = vadd.f32 %v4863_v45, %v210_v20  ;;  %v4414_v20 = vld [vmem:[#allocation5 + $0x524] ss:$16 sps:$4 sm:$0xff]  }
 0x15b   :  { %2647 = vmatmul.mubr.bf16.vlgmr.msra.gmra.mrb[4].mxu0 %v1048_v27  ;;  %2811 = vmatmul.mubr.bf16.vlgmr.msra.gmra.mrb[12].mxu1 %v1048_v27  ;;  %v4349_v27 = vld [vmem:[#allocation5 + $0x3c8] ss:$16 sps:$4 sm:$0xff]  }
 0x15c   :  { %2656 = vmatpush1.bf16.msra.mxu0 %v4262_v25  ;;  %2820 = vmatpush1.bf16.msra.mxu1 %v4265_v26  ;;  %v208_v25 = vld [vmem:[%s4969_s1 + $0x18] sm:$0xff]  ;;  %v4346_v26 = vld [vmem:[#allocation5 + $0x3c0] ss:$16 sps:$4 sm:$0xff]   ;;  %vm1029_vm3 = vcmp.gt.f32.partialorder %v979_v24, 0.0 }
 0x15d   :  { %2657 = vmatprep.subr.bf16.mxu0 %v4270_v28  ;;  %2821 = vmatprep.subr.bf16.mxu1 %v4273_v29  ;;  %v4354_v29 = vld [vmem:[#allocation5 + $0x3e4] ss:$16 sps:$4 sm:$0xff]  }
 0x160   :  { %2658 = vmatpush1.bf16.msra.mxu0 %v4268_v30  ;;  %2822 = vmatpush1.bf16.msra.mxu1 %v4271_v31  ;;  %v4357_v30 = vld [vmem:[#allocation5 + $0x3ec] ss:$16 sps:$4 sm:$0xff]  }
 0x161   :  { %2659 = vmatprep.subr.bf16.mxu0 %v4276_v32  ;;  %2823 = vmatprep.subr.bf16.mxu1 %v4279_v33  ;;  %v4352_v33 = vld [vmem:[#allocation5 + $0x3e0] ss:$16 sps:$4 sm:$0xff]  }
 0x164   :  { %2660 = vmatpush1.bf16.msra.mxu0 %v4274_v34  ;;  %2824 = vmatpush1.bf16.msra.mxu1 %v4277_v35  ;;  %v4355_v34 = vld [vmem:[#allocation5 + $0x3e8] ss:$16 sps:$4 sm:$0xff]  }
 0x165   :  { %2661 = vmatprep.subr.bf16.mxu0 %v4282_v36  ;;  %2825 = vmatprep.subr.bf16.mxu1 %v4285_v37  ;;  %v4360_v37 = vld [vmem:[#allocation5 + $0x404] ss:$16 sps:$4 sm:$0xff]  }
 0x168   :  { %2662 = vmatpush1.bf16.msra.mxu0 %v4280_v38  ;;  %2826 = vmatpush1.bf16.msra.mxu1 %v4283_v39  ;;  %v1037_v38 = vmul.f32 0.2, %v979_v24 }
 0x169   :  { %2663 = vmatprep.subr.bf16.mxu0 %v4288_v40  ;;  %2827 = vmatprep.subr.bf16.mxu1 %v4291_v41 }
 0x16c   :  { %2664 = vmatpush1.bf16.msra.mxu0 %v4286_v43  ;;  %2828 = vmatpush1.bf16.msra.mxu1 %v4289_v44  ;;  %v4363_v43 = vld [vmem:[#allocation5 + $0x40c] ss:$16 sps:$4 sm:$0xff]  }
 0x16d   :  { %2665 = vmatprep.subr.bf16.mxu0 %v4294_v46  ;;  %2829 = vmatprep.subr.bf16.mxu1 %v4297_v47  ;;  %v1045_v46 = vsel %vm1029_vm3, %v979_v24, %v1037_v38  ;;  %v4420_v24 = vld [vmem:[#allocation5 + $0x544] ss:$16 sps:$4 sm:$0xff]  }
 0x16e   :  { %v209_v38 = vld [vmem:[%s4969_s1 + $0x20] sm:$0xff] }
 0x170   :  { %2666 = vmatpush1.bf16.msra.mxu0 %v4292_v50  ;;  %2830 = vmatpush1.bf16.msra.mxu1 %v4295_v51  ;;  %v4366_v51 = vld [vmem:[#allocation5 + $0x424] ss:$16 sps:$4 sm:$0xff]  }
 0x171   :  { %2667 = vmatprep.subr.bf16.mxu0 %v4300_v52  ;;  %2831 = vmatprep.subr.bf16.mxu1 %v4303_v53  ;;  %v4369_v52 = vld [vmem:[#allocation5 + $0x42c] ss:$16 sps:$4 sm:$0xff]   ;;  %v1053_v53 = vpack.c.bf16 %v1045_v46, %v1045_v46  ;;  %v4445_v46 = vld [vmem:[#allocation5 + $0x5c8] ss:$16 sps:$4 sm:$0xff]  }
 0x174   :  { %2668 = vmatpush1.bf16.msra.mxu0 %v4298_v54  ;;  %2832 = vmatpush1.bf16.msra.mxu1 %v4301_v56  ;;  %v4364_v54 = vld [vmem:[#allocation5 + $0x420] ss:$16 sps:$4 sm:$0xff]   ;;  %v4367_v56 = vld [vmem:[#allocation5 + $0x428] ss:$16 sps:$4 sm:$0xff]  }
 0x175   :  { %2669 = vmatprep.subr.bf16.mxu0 %v4306_v55  ;;  %2833 = vmatprep.subr.bf16.mxu1 %v4309_v57  ;;  %v4372_v55 = vld [vmem:[#allocation5 + $0x444] ss:$16 sps:$4 sm:$0xff]   ;;  %v4375_v57 = vld [vmem:[#allocation5 + $0x44c] ss:$16 sps:$4 sm:$0xff]  }
 0x178   :  { %2670 = vmatpush1.bf16.msra.mxu0 %v4304_v19  ;;  %2834 = vmatpush1.bf16.msra.mxu1 %v4307_v58  ;;  %v4370_v19 = vld [vmem:[#allocation5 + $0x440] ss:$16 sps:$4 sm:$0xff]   ;;  %v4373_v58 = vld [vmem:[#allocation5 + $0x448] ss:$16 sps:$4 sm:$0xff]  }
 0x179   :  { %2671 = vmatprep.subr.bf16.mxu0 %v4312_v59  ;;  %2835 = vmatprep.subr.bf16.mxu1 %v4315_v60  ;;  %v4378_v59 = vld [vmem:[#allocation5 + $0x464] ss:$16 sps:$4 sm:$0xff]   ;;  %v4381_v60 = vld [vmem:[#allocation5 + $0x46c] ss:$16 sps:$4 sm:$0xff]  }
 0x17c   :  { %2672 = vmatpush1.bf16.msra.mxu0 %v4310_v61  ;;  %2836 = vmatpush1.bf16.msra.mxu1 %v4313_v62  ;;  %v4376_v61 = vld [vmem:[#allocation5 + $0x460] ss:$16 sps:$4 sm:$0xff]   ;;  %v4379_v62 = vld [vmem:[#allocation5 + $0x468] ss:$16 sps:$4 sm:$0xff]  }
 0x17d   :  { %2673 = vmatprep.subr.bf16.mxu0 %v4318_v63  ;;  %2837 = vmatprep.subr.bf16.mxu1 %v4321_v0  ;;  %v4384_v63 = vld [vmem:[#allocation5 + $0x484] ss:$16 sps:$4 sm:$0xff]   ;;  %v4387_v0 = vld [vmem:[#allocation5 + $0x48c] ss:$16 sps:$4 sm:$0xff]  }
 0x180   :  { %2674 = vmatpush1.bf16.msra.mxu0 %v4316_v1  ;;  %2838 = vmatpush1.bf16.msra.mxu1 %v4319_v2  ;;  %v4382_v1 = vld [vmem:[#allocation5 + $0x480] ss:$16 sps:$4 sm:$0xff]   ;;  %v4385_v2 = vld [vmem:[#allocation5 + $0x488] ss:$16 sps:$4 sm:$0xff]  }
 0x181   :  { %2675 = vmatprep.subr.bf16.mxu0 %v4324_v18  ;;  %2839 = vmatprep.subr.bf16.mxu1 %v4327_v3  ;;  %v4390_v18 = vld [vmem:[#allocation5 + $0x4a4] ss:$16 sps:$4 sm:$0xff]   ;;  %v4393_v3 = vld [vmem:[#allocation5 + $0x4ac] ss:$16 sps:$4 sm:$0xff]  }
 0x184   :  { %2676 = vmatpush1.bf16.msra.mxu0 %v4322_v4  ;;  %2840 = vmatpush1.bf16.msra.mxu1 %v4325_v5  ;;  %v4388_v4 = vld [vmem:[#allocation5 + $0x4a0] ss:$16 sps:$4 sm:$0xff]   ;;  %v4391_v5 = vld [vmem:[#allocation5 + $0x4a8] ss:$16 sps:$4 sm:$0xff]  }
 0x185   :  { %2677 = vmatprep.subr.bf16.mxu0 %v4330_v6  ;;  %2841 = vmatprep.subr.bf16.mxu1 %v4333_v7  ;;  %v4396_v6 = vld [vmem:[#allocation5 + $0x4c4] ss:$16 sps:$4 sm:$0xff]   ;;  %v4399_v7 = vld [vmem:[#allocation5 + $0x4cc] ss:$16 sps:$4 sm:$0xff]  }
 0x188   :  { %2678 = vmatpush1.bf16.msra.mxu0 %v4328_v8  ;;  %2842 = vmatpush1.bf16.msra.mxu1 %v4331_v9  ;;  %v4394_v8 = vld [vmem:[#allocation5 + $0x4c0] ss:$16 sps:$4 sm:$0xff]   ;;  %v4397_v9 = vld [vmem:[#allocation5 + $0x4c8] ss:$16 sps:$4 sm:$0xff]  }
 0x189   :  { %2679 = vmatprep.subr.bf16.mxu0 %v4336_v10  ;;  %2843 = vmatprep.subr.bf16.mxu1 %v4339_v11  ;;  %v4402_v10 = vld [vmem:[#allocation5 + $0x4e4] ss:$16 sps:$4 sm:$0xff]   ;;  %v4405_v11 = vld [vmem:[#allocation5 + $0x4ec] ss:$16 sps:$4 sm:$0xff]  }
 0x18c   :  { %2680 = vmatpush1.bf16.msra.mxu0 %v4334_v12  ;;  %2844 = vmatpush1.bf16.msra.mxu1 %v4337_v13  ;;  %v4400_v12 = vld [vmem:[#allocation5 + $0x4e0] ss:$16 sps:$4 sm:$0xff]   ;;  %v4403_v13 = vld [vmem:[#allocation5 + $0x4e8] ss:$16 sps:$4 sm:$0xff]  }
 0x18d   :  { %2681 = vmatprep.subr.bf16.mxu0 %v4342_v14  ;;  %2845 = vmatprep.subr.bf16.mxu1 %v4345_v15  ;;  %v4408_v14 = vld [vmem:[#allocation5 + $0x504] ss:$16 sps:$4 sm:$0xff]   ;;  %v4411_v15 = vld [vmem:[#allocation5 + $0x50c] ss:$16 sps:$4 sm:$0xff]  }
 0x190   :  { %2682 = vmatpush1.bf16.msra.mxu0 %v4340_v16  ;;  %2846 = vmatpush1.bf16.msra.mxu1 %v4343_v17  ;;  %v4406_v16 = vld [vmem:[#allocation5 + $0x500] ss:$16 sps:$4 sm:$0xff]   ;;  %v4409_v17 = vld [vmem:[#allocation5 + $0x508] ss:$16 sps:$4 sm:$0xff]  }
 0x191   :  { %v935_v28 = vpop.f32.mrb[4].mxu1  ;;  %2683 = vmatprep.subr.bf16.mxu0 %v4348_v21  ;;  %2847 = vmatprep.subr.bf16.mxu1 %v4351_v22  ;;  %v4417_v21 = vld [vmem:[#allocation5 + $0x52c] ss:$16 sps:$4 sm:$0xff]   ;;  %v4412_v22 = vld [vmem:[#allocation5 + $0x520] ss:$16 sps:$4 sm:$0xff]  }
 0x192   :  { %v936_v31 = vadd.f32 %v935_v28, %v207_v23  ;;  %v937_v32 = vpop.f32.mrb[5].mxu1  ;;  %v4415_v23 = vld [vmem:[#allocation5 + $0x528] ss:$16 sps:$4 sm:$0xff]   ;;  %v4426_v28 = vld [vmem:[#allocation5 + $0x564] ss:$16 sps:$4 sm:$0xff]  }
 0x193   :  { %v938_v35 = vadd.f32 %v937_v32, %v208_v25  ;;  %v939_v36 = vpop.f32.mrb[6].mxu1  ;;  %v4423_v25 = vld [vmem:[#allocation5 + $0x54c] ss:$16 sps:$4 sm:$0xff]   ;;  %v4432_v32 = vld [vmem:[#allocation5 + $0x584] ss:$16 sps:$4 sm:$0xff]  }
 0x194   :  { %vm1026_vm2 = vcmp.gt.f32.partialorder %v936_v31, 0.0  ;;  %v1034_v39 = vmul.f32 0.2, %v936_v31  ;;  %2684 = vmatpush1.bf16.msra.mxu0 %v4346_v26  ;;  %2848 = vmatpush1.bf16.msra.mxu1 %v4349_v27  ;;  %v940_v40 = vpop.f32.mrb[7].mxu1  ;;  %v4418_v26 = vld [vmem:[#allocation5 + $0x540] ss:$16 sps:$4 sm:$0xff]  }
 0x195   :  { %vm1027_vm4 = vcmp.gt.f32.partialorder %v938_v35, 0.0  ;;  %v1035_v41 = vmul.f32 0.2, %v938_v35  ;;  %2685 = vmatprep.subr.bf16.mxu0 %v4354_v29  ;;  %2849 = vmatprep.subr.bf16.mxu1 %v4357_v30  ;;  %v4421_v27 = vld [vmem:[#allocation5 + $0x548] ss:$16 sps:$4 sm:$0xff]  }
 0x196   :  { %v1042_v44 = vsel %vm1026_vm2, %v936_v31, %v1034_v39  ;;  %v4429_v29 = vld [vmem:[#allocation5 + $0x56c] ss:$16 sps:$4 sm:$0xff]   ;;  %v4424_v30 = vld [vmem:[#allocation5 + $0x560] ss:$16 sps:$4 sm:$0xff]   ;;  %v4427_v31 = vld [vmem:[#allocation5 + $0x568] ss:$16 sps:$4 sm:$0xff]  }
 0x197   :  { %v1043_v45 = vsel %vm1027_vm4, %v938_v35, %v1035_v41  ;;  %v1050_v50 = vpack.c.bf16 %v1042_v44, %v1042_v44  ;;  %v4433_v35 = vld [vmem:[#allocation5 + $0x588] ss:$16 sps:$4 sm:$0xff]   ;;  %v4438_v36 = vld [vmem:[#allocation5 + $0x5a4] ss:$16 sps:$4 sm:$0xff]   ;;  %v4436_v39 = vld [vmem:[#allocation5 + $0x5a0] ss:$16 sps:$4 sm:$0xff]   ;;  %v977_v44 = vadd.f32 %v4861_v42, %v209_v38 }
 0x198   :  { %2686 = vmatpush1.bf16.msra.mxu0 %v4352_v33  ;;  %2850 = vmatpush1.bf16.msra.mxu1 %v4355_v34  ;;  %v1051_v47 = vpack.c.bf16 %v1043_v45, %v1043_v45  ;;  %v4435_v33 = vld [vmem:[#allocation5 + $0x58c] ss:$16 sps:$4 sm:$0xff]   ;;  %v4430_v34 = vld [vmem:[#allocation5 + $0x580] ss:$16 sps:$4 sm:$0xff]   ;;  %v4439_v40 = vld [vmem:[#allocation5 + $0x5a8] ss:$16 sps:$4 sm:$0xff]  }
 0x199   :  { %2696 = vmatprep.subr.bf16.mxu0 %v4360_v37  ;;  %2860 = vmatprep.subr.bf16.mxu1 %v4363_v43  ;;  %v4441_v37 = vld [vmem:[#allocation5 + $0x5ac] ss:$16 sps:$4 sm:$0xff]   ;;  %v4444_v41 = vld [vmem:[#allocation5 + $0x5c4] ss:$16 sps:$4 sm:$0xff]   ;;  %v4442_v45 = vld [vmem:[#allocation5 + $0x5c0] ss:$16 sps:$4 sm:$0xff]  }
 0x19a   :  { %2687 = vmatprep.mubr.bf16.mxu0 %v1051_v47  ;;  %2851 = vmatprep.mubr.bf16.mxu1 %v1051_v47  ;;  %v4447_v43 = vld [vmem:[#allocation5 + $0x5cc] ss:$16 sps:$4 sm:$0xff]   ;;  %vm1028_vm5 = vcmp.gt.f32.partialorder %v977_v44, 0.0  ;;  %v4516_v38 = vld [vmem:[#allocation5 + $0x744] ss:$16 sps:$4 sm:$0xff]  }
 0x19b   :  { %2688 = vmatmul.mubr.bf16.vlgmr.msra.gmra.mrb[4].mxu0 %v1050_v50  ;;  %2852 = vmatmul.mubr.bf16.vlgmr.msra.gmra.mrb[12].mxu1 %v1050_v50  ;;  %v212_v47 = vld [vmem:[%s4969_s1 + $0x38] sm:$0xff] }
 0x19c   :  { %2697 = vmatpush1.bf16.msra.mxu0 %v4358_v48  ;;  %2861 = vmatpush1.bf16.msra.mxu1 %v4361_v49  ;;  %v4450_v48 = vld [vmem:[#allocation5 + $0x5e4] ss:$16 sps:$4 sm:$0xff]   ;;  %v4453_v49 = vld [vmem:[#allocation5 + $0x5ec] ss:$16 sps:$4 sm:$0xff]  }
 0x19d   :  { %2698 = vmatprep.subr.bf16.mxu0 %v4366_v51  ;;  %2862 = vmatprep.subr.bf16.mxu1 %v4369_v52  ;;  %v1036_v51 = vmul.f32 0.2, %v977_v44 }
 0x19e   :  { %2728 = vmatprep.mubr.bf16.mxu0 %v1053_v53  ;;  %2892 = vmatprep.mubr.bf16.mxu1 %v1053_v53  ;;  %v4448_v53 = vld [vmem:[#allocation5 + $0x5e0] ss:$16 sps:$4 sm:$0xff]  }
 0x1a0   :  { %2699 = vmatpush1.bf16.msra.mxu0 %v4364_v54  ;;  %2863 = vmatpush1.bf16.msra.mxu1 %v4367_v56  ;;  %v4451_v56 = vld [vmem:[#allocation5 + $0x5e8] ss:$16 sps:$4 sm:$0xff]  }
 0x1a1   :  { %2700 = vmatprep.subr.bf16.mxu0 %v4372_v55  ;;  %2864 = vmatprep.subr.bf16.mxu1 %v4375_v57  ;;  %v4456_v55 = vld [vmem:[#allocation5 + $0x604] ss:$16 sps:$4 sm:$0xff]  }
 0x1a4   :  { %2701 = vmatpush1.bf16.msra.mxu0 %v4370_v19  ;;  %2865 = vmatpush1.bf16.msra.mxu1 %v4373_v58  ;;  %v4459_v19 = vld [vmem:[#allocation5 + $0x60c] ss:$16 sps:$4 sm:$0xff]  }
 0x1a5   :  { %2702 = vmatprep.subr.bf16.mxu0 %v4378_v59  ;;  %2866 = vmatprep.subr.bf16.mxu1 %v4381_v60  ;;  %v1044_v59 = vsel %vm1028_vm5, %v977_v44, %v1036_v51  ;;  %v4525_v44 = vld [vmem:[#allocation5 + $0x76c] ss:$16 sps:$4 sm:$0xff]   ;;  %v4529_v51 = vld [vmem:[#allocation5 + $0x788] ss:$16 sps:$4 sm:$0xff]  }
 0x1a8   :  { %2703 = vmatpush1.bf16.msra.mxu0 %v4376_v61  ;;  %2867 = vmatpush1.bf16.msra.mxu1 %v4379_v62  ;;  %v4454_v61 = vld [vmem:[#allocation5 + $0x600] ss:$16 sps:$4 sm:$0xff]   ;;  %v4457_v62 = vld [vmem:[#allocation5 + $0x608] ss:$16 sps:$4 sm:$0xff]  }
 0x1a9   :  { %2704 = vmatprep.subr.bf16.mxu0 %v4384_v63  ;;  %2868 = vmatprep.subr.bf16.mxu1 %v4387_v0  ;;  %v1052_v63 = vpack.c.bf16 %v1044_v59, %v1044_v59  ;;  %v4462_v0 = vld [vmem:[#allocation5 + $0x624] ss:$16 sps:$4 sm:$0xff]   ;;  %v4541_v59 = vld [vmem:[#allocation5 + $0x7c8] ss:$16 sps:$4 sm:$0xff]  }
 0x1ac   :  { %2705 = vmatpush1.bf16.msra.mxu0 %v4382_v1  ;;  %2869 = vmatpush1.bf16.msra.mxu1 %v4385_v2  ;;  %v4465_v1 = vld [vmem:[#allocation5 + $0x62c] ss:$16 sps:$4 sm:$0xff]  }
 0x1ad   :  { %2706 = vmatprep.subr.bf16.mxu0 %v4390_v18  ;;  %2870 = vmatprep.subr.bf16.mxu1 %v4393_v3  ;;  %v4460_v18 = vld [vmem:[#allocation5 + $0x620] ss:$16 sps:$4 sm:$0xff]   ;;  %v4463_v3 = vld [vmem:[#allocation5 + $0x628] ss:$16 sps:$4 sm:$0xff]  }
 0x1b0   :  { %2707 = vmatpush1.bf16.msra.mxu0 %v4388_v4  ;;  %2871 = vmatpush1.bf16.msra.mxu1 %v4391_v5  ;;  %v4468_v4 = vld [vmem:[#allocation5 + $0x644] ss:$16 sps:$4 sm:$0xff]   ;;  %v4471_v5 = vld [vmem:[#allocation5 + $0x64c] ss:$16 sps:$4 sm:$0xff]  }
 0x1b1   :  { %2708 = vmatprep.subr.bf16.mxu0 %v4396_v6  ;;  %2872 = vmatprep.subr.bf16.mxu1 %v4399_v7  ;;  %v4466_v6 = vld [vmem:[#allocation5 + $0x640] ss:$16 sps:$4 sm:$0xff]   ;;  %v4469_v7 = vld [vmem:[#allocation5 + $0x648] ss:$16 sps:$4 sm:$0xff]  }
 0x1b4   :  { %2709 = vmatpush1.bf16.msra.mxu0 %v4394_v8  ;;  %2873 = vmatpush1.bf16.msra.mxu1 %v4397_v9  ;;  %v4474_v8 = vld [vmem:[#allocation5 + $0x664] ss:$16 sps:$4 sm:$0xff]   ;;  %v4477_v9 = vld [vmem:[#allocation5 + $0x66c] ss:$16 sps:$4 sm:$0xff]  }
 0x1b5   :  { %2710 = vmatprep.subr.bf16.mxu0 %v4402_v10  ;;  %2874 = vmatprep.subr.bf16.mxu1 %v4405_v11  ;;  %v4472_v10 = vld [vmem:[#allocation5 + $0x660] ss:$16 sps:$4 sm:$0xff]   ;;  %v4475_v11 = vld [vmem:[#allocation5 + $0x668] ss:$16 sps:$4 sm:$0xff]  }
 0x1b8   :  { %2711 = vmatpush1.bf16.msra.mxu0 %v4400_v12  ;;  %2875 = vmatpush1.bf16.msra.mxu1 %v4403_v13  ;;  %v4480_v12 = vld [vmem:[#allocation5 + $0x684] ss:$16 sps:$4 sm:$0xff]   ;;  %v4483_v13 = vld [vmem:[#allocation5 + $0x68c] ss:$16 sps:$4 sm:$0xff]  }
 0x1b9   :  { %2712 = vmatprep.subr.bf16.mxu0 %v4408_v14  ;;  %2876 = vmatprep.subr.bf16.mxu1 %v4411_v15  ;;  %v4478_v14 = vld [vmem:[#allocation5 + $0x680] ss:$16 sps:$4 sm:$0xff]   ;;  %v4481_v15 = vld [vmem:[#allocation5 + $0x688] ss:$16 sps:$4 sm:$0xff]  }
 0x1bc   :  { %2713 = vmatpush1.bf16.msra.mxu0 %v4406_v16  ;;  %2877 = vmatpush1.bf16.msra.mxu1 %v4409_v17  ;;  %v4486_v16 = vld [vmem:[#allocation5 + $0x6a4] ss:$16 sps:$4 sm:$0xff]   ;;  %v4489_v17 = vld [vmem:[#allocation5 + $0x6ac] ss:$16 sps:$4 sm:$0xff]  }
 0x1bd   :  { %2714 = vmatprep.subr.bf16.mxu0 %v4414_v20  ;;  %2878 = vmatprep.subr.bf16.mxu1 %v4417_v21  ;;  %v4484_v20 = vld [vmem:[#allocation5 + $0x6a0] ss:$16 sps:$4 sm:$0xff]   ;;  %v4487_v21 = vld [vmem:[#allocation5 + $0x6a8] ss:$16 sps:$4 sm:$0xff]  }
 0x1c0   :  { %2715 = vmatpush1.bf16.msra.mxu0 %v4412_v22  ;;  %2879 = vmatpush1.bf16.msra.mxu1 %v4415_v23  ;;  %v4492_v22 = vld [vmem:[#allocation5 + $0x6c4] ss:$16 sps:$4 sm:$0xff]   ;;  %v4495_v23 = vld [vmem:[#allocation5 + $0x6cc] ss:$16 sps:$4 sm:$0xff]  }
 0x1c1   :  { %2716 = vmatprep.subr.bf16.mxu0 %v4420_v24  ;;  %2880 = vmatprep.subr.bf16.mxu1 %v4423_v25  ;;  %v4490_v24 = vld [vmem:[#allocation5 + $0x6c0] ss:$16 sps:$4 sm:$0xff]   ;;  %v4493_v25 = vld [vmem:[#allocation5 + $0x6c8] ss:$16 sps:$4 sm:$0xff]  }
 0x1c4   :  { %2717 = vmatpush1.bf16.msra.mxu0 %v4418_v26  ;;  %2881 = vmatpush1.bf16.msra.mxu1 %v4421_v27  ;;  %v4498_v26 = vld [vmem:[#allocation5 + $0x6e4] ss:$16 sps:$4 sm:$0xff]   ;;  %v4501_v27 = vld [vmem:[#allocation5 + $0x6ec] ss:$16 sps:$4 sm:$0xff]  }
 0x1c5   :  { %2718 = vmatprep.subr.bf16.mxu0 %v4426_v28  ;;  %2882 = vmatprep.subr.bf16.mxu1 %v4429_v29  ;;  %v4496_v28 = vld [vmem:[#allocation5 + $0x6e0] ss:$16 sps:$4 sm:$0xff]   ;;  %v4499_v29 = vld [vmem:[#allocation5 + $0x6e8] ss:$16 sps:$4 sm:$0xff]  }
 0x1c8   :  { %2719 = vmatpush1.bf16.msra.mxu0 %v4424_v30  ;;  %2883 = vmatpush1.bf16.msra.mxu1 %v4427_v31  ;;  %v4504_v30 = vld [vmem:[#allocation5 + $0x704] ss:$16 sps:$4 sm:$0xff]   ;;  %v4507_v31 = vld [vmem:[#allocation5 + $0x70c] ss:$16 sps:$4 sm:$0xff]  }
 0x1c9   :  { %2720 = vmatprep.subr.bf16.mxu0 %v4432_v32  ;;  %2884 = vmatprep.subr.bf16.mxu1 %v4435_v33  ;;  %v4502_v32 = vld [vmem:[#allocation5 + $0x700] ss:$16 sps:$4 sm:$0xff]   ;;  %v4505_v33 = vld [vmem:[#allocation5 + $0x708] ss:$16 sps:$4 sm:$0xff]  }
 0x1cc   :  { %2721 = vmatpush1.bf16.msra.mxu0 %v4430_v34  ;;  %2885 = vmatpush1.bf16.msra.mxu1 %v4433_v35  ;;  %v4510_v34 = vld [vmem:[#allocation5 + $0x724] ss:$16 sps:$4 sm:$0xff]   ;;  %v4513_v35 = vld [vmem:[#allocation5 + $0x72c] ss:$16 sps:$4 sm:$0xff]  }
 0x1cd   :  { %2722 = vmatprep.subr.bf16.mxu0 %v4438_v36  ;;  %2886 = vmatprep.subr.bf16.mxu1 %v4441_v37  ;;  %v4508_v36 = vld [vmem:[#allocation5 + $0x720] ss:$16 sps:$4 sm:$0xff]   ;;  %v4511_v37 = vld [vmem:[#allocation5 + $0x728] ss:$16 sps:$4 sm:$0xff]  }
 0x1d0   :  { %2723 = vmatpush1.bf16.msra.mxu0 %v4436_v39  ;;  %2887 = vmatpush1.bf16.msra.mxu1 %v4439_v40  ;;  %v4519_v39 = vld [vmem:[#allocation5 + $0x74c] ss:$16 sps:$4 sm:$0xff]   ;;  %v4514_v40 = vld [vmem:[#allocation5 + $0x740] ss:$16 sps:$4 sm:$0xff]  }
 0x1d1   :  { %2724 = vmatprep.subr.bf16.mxu0 %v4444_v41  ;;  %2888 = vmatprep.subr.bf16.mxu1 %v4447_v43  ;;  %v4882_v50 = vpop.f32.mrb[8].mxu1  ;;  %v4517_v41 = vld [vmem:[#allocation5 + $0x748] ss:$16 sps:$4 sm:$0xff]   ;;  %v4522_v43 = vld [vmem:[#allocation5 + $0x764] ss:$16 sps:$4 sm:$0xff]  }
 0x1d2   :  { %v1019_v52 = vpop.f32.mrb[9].mxu1 }
 0x1d3   :  { %v1020_v54 = vadd.f32 %v1019_v52, %v212_v47  ;;  %v1021_v42 = vpop.f32.mrb[10].mxu1  ;;  %v4528_v47 = vld [vmem:[#allocation5 + $0x784] ss:$16 sps:$4 sm:$0xff]  }
 0x1d4   :  { %2725 = vmatpush1.bf16.msra.mxu0 %v4442_v45  ;;  %2889 = vmatpush1.bf16.msra.mxu1 %v4445_v46  ;;  %v1022_v57 = vpop.f32.mrb[11].mxu1  ;;  %v4520_v45 = vld [vmem:[#allocation5 + $0x760] ss:$16 sps:$4 sm:$0xff]   ;;  %v4523_v46 = vld [vmem:[#allocation5 + $0x768] ss:$16 sps:$4 sm:$0xff]  }
 0x1d5   :  { %2726 = vmatprep.subr.bf16.mxu0 %v4450_v48  ;;  %2890 = vmatprep.subr.bf16.mxu1 %v4453_v49  ;;  %vm1031_vm6 = vcmp.gt.f32.partialorder %v1020_v54, 0.0  ;;  %v1039_v58 = vmul.f32 0.2, %v1020_v54  ;;  %v4531_v48 = vld [vmem:[#allocation5 + $0x78c] ss:$16 sps:$4 sm:$0xff]  }
 0x1d6   :  { %v4526_v49 = vld [vmem:[#allocation5 + $0x780] ss:$16 sps:$4 sm:$0xff]   ;;  %v4534_v52 = vld [vmem:[#allocation5 + $0x7a4] ss:$16 sps:$4 sm:$0xff]   ;;  %v4543_v57 = vld [vmem:[#allocation5 + $0x7cc] ss:$16 sps:$4 sm:$0xff]  }
 0x1d7   :  { %v1047_v60 = vsel %vm1031_vm6, %v1020_v54, %v1039_v58  ;;  %v211_v54 = vld [vmem:[%s4969_s1 + $0x30] sm:$0xff] }
 0x1d8   :  { %2727 = vmatpush1.bf16.msra.mxu0 %v4448_v53  ;;  %2891 = vmatpush1.bf16.msra.mxu1 %v4451_v56  ;;  %v1055_v2 = vpack.c.bf16 %v1047_v60, %v1047_v60  ;;  %v4537_v53 = vld [vmem:[#allocation5 + $0x7ac] ss:$16 sps:$4 sm:$0xff]   ;;  %v4532_v42 = vld [vmem:[#allocation5 + $0x7a0] ss:$16 sps:$4 sm:$0xff]   ;;  %v4535_v56 = vld [vmem:[#allocation5 + $0x7a8] ss:$16 sps:$4 sm:$0xff]  }
 0x1d9   :  { %2737 = vmatprep.subr.bf16.mxu0 %v4456_v55  ;;  %2901 = vmatprep.subr.bf16.mxu1 %v4459_v19  ;;  %v4540_v55 = vld [vmem:[#allocation5 + $0x7c4] ss:$16 sps:$4 sm:$0xff]   ;;  %v1018_v19 = vadd.f32 %v4882_v50, %v211_v54  ;;  %v4538_v58 = vld [vmem:[#allocation5 + $0x7c0] ss:$16 sps:$4 sm:$0xff]  }
 0x1da   :  { %v4546_v60 = vld [vmem:[#allocation5 + $0x7e4] ss:$16 sps:$4 sm:$0xff]   ;;  %v4550_v50 = vld [vmem:[#allocation7] ss:$8 sps:$4 sm:$0xff]  }
 0x1db   :  { %2729 = vmatmul.mubr.bf16.vlgmr.msra.gmra.mrb[4].mxu0 %v1052_v63  ;;  %2893 = vmatmul.mubr.bf16.vlgmr.msra.gmra.mrb[12].mxu1 %v1052_v63  ;;  %vm1030_vm7 = vcmp.gt.f32.partialorder %v1018_v19, 0.0  ;;  %v4544_v63 = vld [vmem:[#allocation5 + $0x7e0] ss:$16 sps:$4 sm:$0xff]  }
 0x1dc   :  { %2738 = vmatpush1.bf16.msra.mxu0 %v4454_v61  ;;  %2902 = vmatpush1.bf16.msra.mxu1 %v4457_v62  ;;  %v4549_v61 = vld [vmem:[#allocation5 + $0x7ec] ss:$16 sps:$4 sm:$0xff]   ;;  %v1038_v62 = vmul.f32 0.2, %v1018_v19 }
 0x1dd   :  { %2739 = vmatprep.subr.bf16.mxu0 %v4462_v0  ;;  %2903 = vmatprep.subr.bf16.mxu1 %v4465_v1  ;;  %v4547_v0 = vld [vmem:[#allocation5 + $0x7e8] ss:$16 sps:$4 sm:$0xff]   ;;  %v4552_v1 = vld [vmem:[#allocation7 + $0x4] ss:$8 sps:$4 sm:$0xff]  }
 0x1de   :  { %2769 = vmatprep.mubr.bf16.mxu0 %v1055_v2  ;;  %2933 = vmatprep.mubr.bf16.mxu1 %v1055_v2  ;;  %v1046_v2 = vsel %vm1030_vm7, %v1018_v19, %v1038_v62 }
 0x1e0   :  { %2740 = vmatpush1.bf16.msra.mxu0 %v4460_v18  ;;  %2904 = vmatpush1.bf16.msra.mxu1 %v4463_v3  ;;  %v1054_v18 = vpack.c.bf16 %v1046_v2, %v1046_v2  ;;  %v4555_v3 = vld [vmem:[#allocation7 + $0x14] ss:$8 sps:$4 sm:$0xff]  }
 0x1e1   :  { %2741 = vmatprep.subr.bf16.mxu0 %v4468_v4  ;;  %2905 = vmatprep.subr.bf16.mxu1 %v4471_v5  ;;  %v4553_v4 = vld [vmem:[#allocation7 + $0x10] ss:$8 sps:$4 sm:$0xff]   ;;  %v4558_v5 = vld [vmem:[#allocation7 + $0x24] ss:$8 sps:$4 sm:$0xff]  }
 0x1e4   :  { %2742 = vmatpush1.bf16.msra.mxu0 %v4466_v6  ;;  %2906 = vmatpush1.bf16.msra.mxu1 %v4469_v7  ;;  %v4556_v6 = vld [vmem:[#allocation7 + $0x20] ss:$8 sps:$4 sm:$0xff]   ;;  %v4561_v7 = vld [vmem:[#allocation7 + $0x34] ss:$8 sps:$4 sm:$0xff]  }
 0x1e5   :  { %2743 = vmatprep.subr.bf16.mxu0 %v4474_v8  ;;  %2907 = vmatprep.subr.bf16.mxu1 %v4477_v9  ;;  %v4559_v8 = vld [vmem:[#allocation7 + $0x30] ss:$8 sps:$4 sm:$0xff]   ;;  %v4564_v9 = vld [vmem:[#allocation7 + $0x44] ss:$8 sps:$4 sm:$0xff]  }
 0x1e8   :  { %2744 = vmatpush1.bf16.msra.mxu0 %v4472_v10  ;;  %2908 = vmatpush1.bf16.msra.mxu1 %v4475_v11  ;;  %v4562_v10 = vld [vmem:[#allocation7 + $0x40] ss:$8 sps:$4 sm:$0xff]   ;;  %v4567_v11 = vld [vmem:[#allocation7 + $0x54] ss:$8 sps:$4 sm:$0xff]  }
 0x1e9   :  { %2745 = vmatprep.subr.bf16.mxu0 %v4480_v12  ;;  %2909 = vmatprep.subr.bf16.mxu1 %v4483_v13  ;;  %v4565_v12 = vld [vmem:[#allocation7 + $0x50] ss:$8 sps:$4 sm:$0xff]   ;;  %v4570_v13 = vld [vmem:[#allocation7 + $0x64] ss:$8 sps:$4 sm:$0xff]  }
 0x1ec   :  { %2746 = vmatpush1.bf16.msra.mxu0 %v4478_v14  ;;  %2910 = vmatpush1.bf16.msra.mxu1 %v4481_v15  ;;  %v4568_v14 = vld [vmem:[#allocation7 + $0x60] ss:$8 sps:$4 sm:$0xff]   ;;  %v4573_v15 = vld [vmem:[#allocation7 + $0x74] ss:$8 sps:$4 sm:$0xff]  }
 0x1ed   :  { %2747 = vmatprep.subr.bf16.mxu0 %v4486_v16  ;;  %2911 = vmatprep.subr.bf16.mxu1 %v4489_v17  ;;  %v4571_v16 = vld [vmem:[#allocation7 + $0x70] ss:$8 sps:$4 sm:$0xff]   ;;  %v4576_v17 = vld [vmem:[#allocation7 + $0x84] ss:$8 sps:$4 sm:$0xff]  }
 0x1f0   :  { %2748 = vmatpush1.bf16.msra.mxu0 %v4484_v20  ;;  %2912 = vmatpush1.bf16.msra.mxu1 %v4487_v21  ;;  %v4574_v20 = vld [vmem:[#allocation7 + $0x80] ss:$8 sps:$4 sm:$0xff]   ;;  %v4579_v21 = vld [vmem:[#allocation7 + $0x94] ss:$8 sps:$4 sm:$0xff]  }
 0x1f1   :  { %2749 = vmatprep.subr.bf16.mxu0 %v4492_v22  ;;  %2913 = vmatprep.subr.bf16.mxu1 %v4495_v23  ;;  %v4577_v22 = vld [vmem:[#allocation7 + $0x90] ss:$8 sps:$4 sm:$0xff]   ;;  %v4582_v23 = vld [vmem:[#allocation7 + $0xa4] ss:$8 sps:$4 sm:$0xff]  }
 0x1f4   :  { %2750 = vmatpush1.bf16.msra.mxu0 %v4490_v24  ;;  %2914 = vmatpush1.bf16.msra.mxu1 %v4493_v25  ;;  %v4580_v24 = vld [vmem:[#allocation7 + $0xa0] ss:$8 sps:$4 sm:$0xff]   ;;  %v4585_v25 = vld [vmem:[#allocation7 + $0xb4] ss:$8 sps:$4 sm:$0xff]  }
 0x1f5   :  { %2751 = vmatprep.subr.bf16.mxu0 %v4498_v26  ;;  %2915 = vmatprep.subr.bf16.mxu1 %v4501_v27  ;;  %v4583_v26 = vld [vmem:[#allocation7 + $0xb0] ss:$8 sps:$4 sm:$0xff]   ;;  %v4588_v27 = vld [vmem:[#allocation7 + $0xc4] ss:$8 sps:$4 sm:$0xff]  }
 0x1f8   :  { %2752 = vmatpush1.bf16.msra.mxu0 %v4496_v28  ;;  %2916 = vmatpush1.bf16.msra.mxu1 %v4499_v29  ;;  %v4586_v28 = vld [vmem:[#allocation7 + $0xc0] ss:$8 sps:$4 sm:$0xff]   ;;  %v4591_v29 = vld [vmem:[#allocation7 + $0xd4] ss:$8 sps:$4 sm:$0xff]  }
 0x1f9   :  { %2753 = vmatprep.subr.bf16.mxu0 %v4504_v30  ;;  %2917 = vmatprep.subr.bf16.mxu1 %v4507_v31  ;;  %v4589_v30 = vld [vmem:[#allocation7 + $0xd0] ss:$8 sps:$4 sm:$0xff]   ;;  %v4594_v31 = vld [vmem:[#allocation7 + $0xe4] ss:$8 sps:$4 sm:$0xff]  }
 0x1fc   :  { %2754 = vmatpush1.bf16.msra.mxu0 %v4502_v32  ;;  %2918 = vmatpush1.bf16.msra.mxu1 %v4505_v33  ;;  %v4592_v32 = vld [vmem:[#allocation7 + $0xe0] ss:$8 sps:$4 sm:$0xff]   ;;  %v4597_v33 = vld [vmem:[#allocation7 + $0xf4] ss:$8 sps:$4 sm:$0xff]  }
 0x1fd   :  { %2755 = vmatprep.subr.bf16.mxu0 %v4510_v34  ;;  %2919 = vmatprep.subr.bf16.mxu1 %v4513_v35  ;;  %v4595_v34 = vld [vmem:[#allocation7 + $0xf0] ss:$8 sps:$4 sm:$0xff]   ;;  %v4600_v35 = vld [vmem:[#allocation7 + $0x104] ss:$8 sps:$4 sm:$0xff]  }
 0x200   :  { %2756 = vmatpush1.bf16.msra.mxu0 %v4508_v36  ;;  %2920 = vmatpush1.bf16.msra.mxu1 %v4511_v37  ;;  %v4646_v36 = vld [vmem:[%s4975_s7 + $0x40] sm:$0xff]  }
 0x201   :  { %2757 = vmatprep.subr.bf16.mxu0 %v4516_v38  ;;  %2921 = vmatprep.subr.bf16.mxu1 %v4519_v39  ;;  %v4647_v37 = vld [vmem:[%s4975_s7] sm:$0xff]   ;;  %v4648_v38 = vld [vmem:[%s4975_s7 + $0x48] sm:$0xff]  }
 0x202   :  { %v4649_v39 = vld [vmem:[%s4975_s7 + $0x8] sm:$0xff]  }
 0x204   :  { %2758 = vmatpush1.bf16.msra.mxu0 %v4514_v40  ;;  %2922 = vmatpush1.bf16.msra.mxu1 %v4517_v41  ;;  %v4650_v40 = vld [vmem:[%s4975_s7 + $0x50] sm:$0xff]  }
 0x205   :  { %2759 = vmatprep.subr.bf16.mxu0 %v4522_v43  ;;  %2923 = vmatprep.subr.bf16.mxu1 %v4525_v44  ;;  %v4651_v41 = vld [vmem:[%s4975_s7 + $0x10] sm:$0xff]   ;;  %v4652_v43 = vld [vmem:[%s4975_s7 + $0x58] sm:$0xff]  }
 0x206   :  { %v4653_v44 = vld [vmem:[%s4975_s7 + $0x18] sm:$0xff]  }
 0x208   :  { %2760 = vmatpush1.bf16.msra.mxu0 %v4520_v45  ;;  %2924 = vmatpush1.bf16.msra.mxu1 %v4523_v46  ;;  %v4654_v45 = vld [vmem:[%s4975_s7 + $0x60] sm:$0xff]  }
 0x209   :  { %2761 = vmatprep.subr.bf16.mxu0 %v4528_v47  ;;  %2925 = vmatprep.subr.bf16.mxu1 %v4531_v48  ;;  %v4655_v46 = vld [vmem:[%s4975_s7 + $0x20] sm:$0xff]   ;;  %v4656_v47 = vld [vmem:[%s4975_s7 + $0x68] sm:$0xff]  }
 0x20a   :  { %v4657_v48 = vld [vmem:[%s4975_s7 + $0x28] sm:$0xff]  }
 0x20c   :  { %2762 = vmatpush1.bf16.msra.mxu0 %v4526_v49  ;;  %2926 = vmatpush1.bf16.msra.mxu1 %v4529_v51  ;;  %v1314_v49 = vlaneseq }
 0x20d   :  { %2763 = vmatprep.subr.bf16.mxu0 %v4534_v52  ;;  %2927 = vmatprep.subr.bf16.mxu1 %v4537_v53  ;;  %v4930_v53 = vld [vmem:[%s4972_s4] sm:$0xf] }
 0x20e   :  { %v4924_v51 = vshrl.u32 %v1314_v49, 7 }
 0x210   :  { %2764 = vmatpush1.bf16.msra.mxu0 %v4532_v42  ;;  %2928 = vmatpush1.bf16.msra.mxu1 %v4535_v56  ;;  %v1316_v52 = vsub.s32 0, %v4924_v51  ;;  %v1320_v54 = vsub.s32 1, %v4924_v51  ;;  %v1328_v42 = vsub.s32 3, %v4924_v51 }
 0x211   :  { %2765 = vmatprep.subr.bf16.mxu0 %v4540_v55  ;;  %2929 = vmatprep.subr.bf16.mxu1 %v4543_v57 }
 0x212   :  { %v1317_v56 = vrot.slane %v4930_v53, %v1316_v52  ;;  %v1321_v55 = vrot.slane %v4930_v53, %v1320_v54  ;;  %v1329_v57 = vrot.slane %v4930_v53, %v1328_v42 }
 0x214   :  { %2766 = vmatpush1.bf16.msra.mxu0 %v4538_v58  ;;  %2930 = vmatpush1.bf16.msra.mxu1 %v4541_v59 }
 0x215   :  { %2767 = vmatprep.subr.bf16.mxu0 %v4546_v60  ;;  %2931 = vmatprep.subr.bf16.mxu1 %v4549_v61 }
 0x218   :  { %2768 = vmatpush1.bf16.msra.mxu0 %v4544_v63  ;;  %2932 = vmatpush1.bf16.msra.mxu1 %v4547_v0 }
 0x219   :  { %3354 = vmatprep.subr.bf16.mxu0 %v4552_v1  ;;  %4099 = vmatprep.subr.bf16.mxu1 %v4646_v36  ;;  %v4636_v36 = vld [vmem:[#allocation7 + $0x1c4] ss:$8 sps:$4 sm:$0xff]  }
 0x21b   :  { %2770 = vmatmul.mubr.bf16.vlgmr.msra.gmra.mrb[4].mxu0 %v1054_v18  ;;  %2934 = vmatmul.mubr.bf16.vlgmr.msra.gmra.mrb[12].mxu1 %v1054_v18 }
 0x21c   :  { %3355 = vmatpush1.bf16.msra.mxu0 %v4550_v50  ;;  %4100 = vmatpush3.bf16.msra.mxu1 %v4647_v37  ;;  %v1324_v37 = vsub.s32 2, %v4924_v51 }
 0x21d   :  { %3356 = vmatprep.subr.bf16.mxu0 %v4555_v3  ;;  %4101 = vmatprep.subr.bf16.mxu1 %v4648_v38  ;;  %v4634_v38 = vld [vmem:[#allocation7 + $0x1c0] ss:$8 sps:$4 sm:$0xff]  }
 0x220   :  { %3357 = vmatpush1.bf16.msra.mxu0 %v4553_v4  ;;  %4102 = vmatpush3.bf16.msra.mxu1 %v4649_v39  ;;  %v4639_v39 = vld [vmem:[#allocation7 + $0x1d4] ss:$8 sps:$4 sm:$0xff]  }
 0x221   :  { %3358 = vmatprep.subr.bf16.mxu0 %v4558_v5  ;;  %4103 = vmatprep.subr.bf16.mxu1 %v4650_v40  ;;  %v1325_v40 = vrot.slane %v4930_v53, %v1324_v37  ;;  %v4658_v53 = vld [vmem:[%s4975_s7 + $0x70] sm:$0xff]  }
 0x224   :  { %3359 = vmatpush1.bf16.msra.mxu0 %v4556_v6  ;;  %4104 = vmatpush3.bf16.msra.mxu1 %v4651_v41  ;;  %v4637_v41 = vld [vmem:[#allocation7 + $0x1d0] ss:$8 sps:$4 sm:$0xff]  }
 0x225   :  { %3360 = vmatprep.subr.bf16.mxu0 %v4561_v7  ;;  %4105 = vmatprep.subr.bf16.mxu1 %v4652_v43  ;;  %v4642_v43 = vld [vmem:[#allocation7 + $0x1e4] ss:$8 sps:$4 sm:$0xff]  }
 0x228   :  { %3361 = vmatpush1.bf16.msra.mxu0 %v4559_v8  ;;  %4106 = vmatpush3.bf16.msra.mxu1 %v4653_v44 }
 0x229   :  { %3362 = vmatprep.subr.bf16.mxu0 %v4564_v9  ;;  %4107 = vmatprep.subr.bf16.mxu1 %v4654_v45  ;;  %v4598_v9 = vld [vmem:[#allocation7 + $0x100] ss:$8 sps:$4 sm:$0xff]  }
 0x22a   :  { %v4640_v45 = vld [vmem:[#allocation7 + $0x1e0] ss:$8 sps:$4 sm:$0xff]  }
 0x22c   :  { %3363 = vmatpush1.bf16.msra.mxu0 %v4562_v10  ;;  %4108 = vmatpush3.bf16.msra.mxu1 %v4655_v46  ;;  %v4645_v46 = vld [vmem:[#allocation7 + $0x1f4] ss:$8 sps:$4 sm:$0xff]  }
 0x22d   :  { %3364 = vmatprep.subr.bf16.mxu0 %v4567_v11  ;;  %4109 = vmatprep.subr.bf16.mxu1 %v4656_v47  ;;  %v4603_v11 = vld [vmem:[#allocation7 + $0x114] ss:$8 sps:$4 sm:$0xff]  }
 0x230   :  { %3365 = vmatpush1.bf16.msra.mxu0 %v4565_v12  ;;  %4110 = vmatpush3.bf16.msra.mxu1 %v4657_v48  ;;  %v4643_v48 = vld [vmem:[#allocation7 + $0x1f0] ss:$8 sps:$4 sm:$0xff]  }
 0x231   :  { %3366 = vmatprep.subr.bf16.mxu0 %v4570_v13  ;;  %v4601_v13 = vld [vmem:[#allocation7 + $0x110] ss:$8 sps:$4 sm:$0xff]   ;;  %4111 = vmatprep.subr.bf16.mxu1 %v4658_v53 }
 0x234   :  { %3367 = vmatpush1.bf16.msra.mxu0 %v4568_v14  ;;  %v4606_v14 = vld [vmem:[#allocation7 + $0x124] ss:$8 sps:$4 sm:$0xff]  }
 0x235   :  { %3368 = vmatprep.subr.bf16.mxu0 %v4573_v15  ;;  %v4604_v15 = vld [vmem:[#allocation7 + $0x120] ss:$8 sps:$4 sm:$0xff]  }
 0x238   :  { %3369 = vmatpush1.bf16.msra.mxu0 %v4571_v16  ;;  %v4609_v16 = vld [vmem:[#allocation7 + $0x134] ss:$8 sps:$4 sm:$0xff]  }
 0x239   :  { %3370 = vmatprep.subr.bf16.mxu0 %v4576_v17  ;;  %v4607_v17 = vld [vmem:[#allocation7 + $0x130] ss:$8 sps:$4 sm:$0xff]  }
 0x23c   :  { %3371 = vmatpush1.bf16.msra.mxu0 %v4574_v20  ;;  %v4612_v20 = vld [vmem:[#allocation7 + $0x144] ss:$8 sps:$4 sm:$0xff]  }
 0x23d   :  { %3372 = vmatprep.subr.bf16.mxu0 %v4579_v21  ;;  %v4610_v21 = vld [vmem:[#allocation7 + $0x140] ss:$8 sps:$4 sm:$0xff]  }
 0x240   :  { %3373 = vmatpush1.bf16.msra.mxu0 %v4577_v22  ;;  %v4615_v22 = vld [vmem:[#allocation7 + $0x154] ss:$8 sps:$4 sm:$0xff]  }
 0x241   :  { %3374 = vmatprep.subr.bf16.mxu0 %v4582_v23  ;;  %v4613_v23 = vld [vmem:[#allocation7 + $0x150] ss:$8 sps:$4 sm:$0xff]  }
 0x244   :  { %3375 = vmatpush1.bf16.msra.mxu0 %v4580_v24  ;;  %v4618_v24 = vld [vmem:[#allocation7 + $0x164] ss:$8 sps:$4 sm:$0xff]  }
 0x245   :  { %3376 = vmatprep.subr.bf16.mxu0 %v4585_v25  ;;  %v4616_v25 = vld [vmem:[#allocation7 + $0x160] ss:$8 sps:$4 sm:$0xff]  }
 0x248   :  { %3377 = vmatpush1.bf16.msra.mxu0 %v4583_v26  ;;  %v4621_v26 = vld [vmem:[#allocation7 + $0x174] ss:$8 sps:$4 sm:$0xff]  }
 0x249   :  { %3378 = vmatprep.subr.bf16.mxu0 %v4588_v27  ;;  %v4619_v27 = vld [vmem:[#allocation7 + $0x170] ss:$8 sps:$4 sm:$0xff]  }
 0x24c   :  { %3379 = vmatpush1.bf16.msra.mxu0 %v4586_v28  ;;  %v4624_v28 = vld [vmem:[#allocation7 + $0x184] ss:$8 sps:$4 sm:$0xff]  }
 0x24d   :  { %3380 = vmatprep.subr.bf16.mxu0 %v4591_v29  ;;  %v4622_v29 = vld [vmem:[#allocation7 + $0x180] ss:$8 sps:$4 sm:$0xff]  }
 0x250   :  { %3381 = vmatpush1.bf16.msra.mxu0 %v4589_v30  ;;  %v4627_v30 = vld [vmem:[#allocation7 + $0x194] ss:$8 sps:$4 sm:$0xff]  }
 0x251   :  { %3382 = vmatprep.subr.bf16.mxu0 %v4594_v31  ;;  %v4625_v31 = vld [vmem:[#allocation7 + $0x190] ss:$8 sps:$4 sm:$0xff]  }
 0x254   :  { %3383 = vmatpush1.bf16.msra.mxu0 %v4592_v32  ;;  %v4630_v32 = vld [vmem:[#allocation7 + $0x1a4] ss:$8 sps:$4 sm:$0xff]  }
 0x255   :  { %3384 = vmatprep.subr.bf16.mxu0 %v4597_v33  ;;  %v4628_v33 = vld [vmem:[#allocation7 + $0x1a0] ss:$8 sps:$4 sm:$0xff]  }
 0x258   :  { %3385 = vmatpush1.bf16.msra.mxu0 %v4595_v34  ;;  %v4633_v34 = vld [vmem:[#allocation7 + $0x1b4] ss:$8 sps:$4 sm:$0xff]  }
 0x259   :  { %3395 = vmatprep.subr.bf16.mxu0 %v4600_v35  ;;  %v4631_v35 = vld [vmem:[#allocation7 + $0x1b0] ss:$8 sps:$4 sm:$0xff]  }
 0x2ee   :  { %v2771_v19 = vpop.f32.mrb[4].mxu0  ;;  %v4941_v58 = vpop.f32.mrb[12].mxu1 }
 0x2ef   :  { %v4121_v59 = vadd.f32 %v2771_v19, %v1317_v56  ;;  %v2773_v60 = vpop.f32.mrb[5].mxu0  ;;  %v2937_v61 = vpop.f32.mrb[13].mxu1  ;;  %v4123_v44 = vadd.f32 %v4941_v58, %v1325_v40  ;;  %v4659_v56 = vld [vmem:[%s4975_s7 + $0x30] sm:$0xff]   ;;  %v3022_v19 = vld [vmem:[%s4974_s6] sm:$0x3] }
 0x2f0   :  { %v4122_v62 = vadd.f32 %v2773_v60, %v1321_v55  ;;  %v4124_v63 = vadd.f32 %v2937_v61, %v1329_v57  ;;  %v2775_v0 = vpop.f32.mrb[6].mxu0  ;;  %v2939_v1 = vpop.f32.mrb[14].mxu1  ;;  %4112 = vmatpush3.bf16.msra.mxu1 %v4659_v56  ;;  %v4660_v55 = vld [vmem:[%s4975_s7 + $0x78] sm:$0xff]   ;;  %v3027_v58 = vrot.slane %v3022_v19, %v1316_v52 }
 0x2f1   :  { %vm2942_vm8 = vcmp.gt.f32.partialorder %v4121_v59, 0.0  ;;  %v2946_v2 = vmul.f32 0.2, %v4121_v59  ;;  %v2776_v4 = vpop.f32.mrb[7].mxu0  ;;  %v2940_v5 = vpop.f32.mrb[15].mxu1  ;;  %vm2944_vm11 = vcmp.gt.f32.partialorder %v4123_v44, 0.0  ;;  %4113 = vmatprep.subr.bf16.mxu1 %v4660_v55 }
 0x2f2   :  { %vm2943_vm9 = vcmp.gt.f32.partialorder %v4122_v62, 0.0  ;;  %v2947_v50 = vmul.f32 0.2, %v4122_v62  ;;  %vm2945_vm10 = vcmp.gt.f32.partialorder %v4124_v63, 0.0  ;;  %v2949_v18 = vmul.f32 0.2, %v4124_v63 }
 0x2f3   :  { %v2950_v3 = vsel %vm2942_vm8, %v4121_v59, %v2946_v2  ;;  %v2948_v47 = vmul.f32 0.2, %v4123_v44  ;;  %v4661_v57 = vld [vmem:[%s4975_s7 + $0x38] sm:$0xff]   ;;  %v3031_v59 = vrot.slane %v3022_v19, %v1320_v54 }
 0x2f4   :  { %v2951_v6 = vsel %vm2943_vm9, %v4122_v62, %v2947_v50  ;;  %v2953_v7 = vsel %vm2945_vm10, %v4124_v63, %v2949_v18  ;;  %v2954_v10 = vpack.c.bf16 %v2950_v3, %v2950_v3  ;;  %4114 = vmatpush3.bf16.msra.mxu1 %v4661_v57 }
 0x2f5   :  { %v2955_v8 = vpack.c.bf16 %v2951_v6, %v2951_v6  ;;  %v2957_v12 = vpack.c.bf16 %v2953_v7, %v2953_v7  ;;  %v2952_v49 = vsel %vm2944_vm11, %v4123_v44, %v2948_v47  ;;  %v4082_v6 = vld [vmem:[#allocation2] ss:$0 sm:$0xff] }
 0x2f6   :  { %v2956_v42 = vpack.c.bf16 %v2952_v49, %v2952_v49 }
 0x2f7   :  { %3386 = vmatprep.mubr.bf16.mxu0 %v2955_v8 }
 0x2f8   :  { %3387 = vmatmul.mubr.bf16.vlgmr.msra.gmra.mrb[8].mxu0 %v2954_v10 }
 0x2f9   :  { %3396 = vmatpush1.bf16.msra.mxu0 %v4598_v9  ;;  %3427 = vmatprep.mubr.bf16.mxu0 %v2957_v12 }
 0x2fa   :  { %3397 = vmatprep.subr.bf16.mxu0 %v4603_v11 }
 0x2fd   :  { %3398 = vmatpush1.bf16.msra.mxu0 %v4601_v13 }
 0x2fe   :  { %3399 = vmatprep.subr.bf16.mxu0 %v4606_v14 }
 0x301   :  { %3400 = vmatpush1.bf16.msra.mxu0 %v4604_v15 }
 0x302   :  { %3401 = vmatprep.subr.bf16.mxu0 %v4609_v16 }
 0x305   :  { %3402 = vmatpush1.bf16.msra.mxu0 %v4607_v17 }
 0x306   :  { %3403 = vmatprep.subr.bf16.mxu0 %v4612_v20 }
 0x309   :  { %3404 = vmatpush1.bf16.msra.mxu0 %v4610_v21 }
 0x30a   :  { %3405 = vmatprep.subr.bf16.mxu0 %v4615_v22 }
 0x30d   :  { %3406 = vmatpush1.bf16.msra.mxu0 %v4613_v23 }
 0x30e   :  { %3407 = vmatprep.subr.bf16.mxu0 %v4618_v24 }
 0x311   :  { %3408 = vmatpush1.bf16.msra.mxu0 %v4616_v25 }
 0x312   :  { %3409 = vmatprep.subr.bf16.mxu0 %v4621_v26 }
 0x315   :  { %3410 = vmatpush1.bf16.msra.mxu0 %v4619_v27 }
 0x316   :  { %3411 = vmatprep.subr.bf16.mxu0 %v4624_v28 }
 0x319   :  { %3412 = vmatpush1.bf16.msra.mxu0 %v4622_v29 }
 0x31a   :  { %3413 = vmatprep.subr.bf16.mxu0 %v4627_v30 }
 0x31d   :  { %3414 = vmatpush1.bf16.msra.mxu0 %v4625_v31 }
 0x31e   :  { %3415 = vmatprep.subr.bf16.mxu0 %v4630_v32 }
 0x321   :  { %3416 = vmatpush1.bf16.msra.mxu0 %v4628_v33 }
 0x322   :  { %3417 = vmatprep.subr.bf16.mxu0 %v4633_v34 }
 0x325   :  { %3418 = vmatpush1.bf16.msra.mxu0 %v4631_v35 }
 0x326   :  { %3419 = vmatprep.subr.bf16.mxu0 %v4636_v36 }
 0x329   :  { %3420 = vmatpush1.bf16.msra.mxu0 %v4634_v38 }
 0x32a   :  { %3421 = vmatprep.subr.bf16.mxu0 %v4639_v39 }
 0x32d   :  { %3422 = vmatpush1.bf16.msra.mxu0 %v4637_v41 }
 0x32e   :  { %3423 = vmatprep.subr.bf16.mxu0 %v4642_v43 }
 0x331   :  { %3424 = vmatpush1.bf16.msra.mxu0 %v4640_v45 }
 0x332   :  { %3425 = vmatprep.subr.bf16.mxu0 %v4645_v46 }
 0x335   :  { %3426 = vmatpush1.bf16.msra.mxu0 %v4643_v48 }
 0x338   :  { %3428 = vmatmul.mubr.bf16.vlgmr.msra.gmra.mrb[8].mxu0 %v2956_v42 }
 0x40b   :  { %v3429_v60 = vpop.f32.mrb[8].mxu0 }
 0x40c   :  { %v4125_v61 = vadd.f32 %v3429_v60, %v3027_v58  ;;  %v3431_v62 = vpop.f32.mrb[9].mxu0 }
 0x40d   :  { %v4126_v63 = vadd.f32 %v3431_v62, %v3031_v59  ;;  %v3433_v0 = vpop.f32.mrb[10].mxu0 }
 0x40e   :  { %vm3436_vm12 = vcmp.gt.f32.partialorder %v4125_v61, 0.0  ;;  %v3438_v1 = vmul.f32 0.2, %v4125_v61  ;;  %v3434_v2 = vpop.f32.mrb[11].mxu0 }
 0x40f   :  { %vm3437_vm13 = vcmp.gt.f32.partialorder %v4126_v63, 0.0  ;;  %v3439_v50 = vmul.f32 0.2, %v4126_v63 }
 0x410   :  { %v3440_v18 = vsel %vm3436_vm12, %v4125_v61, %v3438_v1 }
 0x411   :  { %v3441_v3 = vsel %vm3437_vm13, %v4126_v63, %v3439_v50  ;;  %v3442_v5 = vpack.c.bf16 %v3440_v18, %v3440_v18 }
 0x412   :  { %v3443_v4 = vpack.c.bf16 %v3441_v3, %v3441_v3 }
 0x414   :  { %3611 = vmatprep.mubr.bf16.mxu1 %v3443_v4 }
 0x415   :  { %3612 = vmatmul.mubr.bf16.vlgmr.msra.gmra.mrb[16].mxu1 %v3442_v5 }
 0x4e8   :  { %v4115_v52 = vpop.f32.mrb[16].mxu1 }
 0x4e9   :  { %v4116_v51 = vpop.f32.mrb[17].mxu1 }
 0x4ea   :  { %v4117_v54 = vadd.f32 %v4116_v51, %v4115_v52  ;;  %v4118_v7 = vpop.f32.mrb[18].mxu1 }
 0x4eb   :  { %v4119_v8 = vpop.f32.mrb[19].mxu1 }
 0x4ec   :  { %v3614_v9 = vadd.f32 %v4117_v54, %v4082_v6 }
 0x4ee   :  { %v3619_v10 = vsub.f32 0.0, %v3614_v9 }
 0x4f0   :  { %v3620_v11 = vmul.f32 1.442695, %v3619_v10 }
 0x4f2   :  { %4662 = vpow2.f32 %v3620_v11 }
 0x4fc   :  { %v4663_v12 = vpop.eup %4662 }
 0x4fd   :  { %v3622_v13 = vadd.f32 1.0, %v4663_v12 }
 0x4ff   :  { %4664 = vrcp.f32 %v3622_v13 }
 0x509   :  { %v4665_v14 = vpop.eup %4664 }
 0x50a   :  { %3625 = vst.msk [vmem:[%s4977_s9] sm:$0xff] %vm3624_vm14, %v4665_v14 }
 0x50b   :  { %3630 = vsyncpa [#allocation4], 1 }
 0x50c   :  { %3631 = vsyncpa [#allocation6], 1 }

</bundles_post_ra>
